<compile_context>
chip_gen: v5e
topology: v5e:2x2
jax: 0.10.0
libtpu: 0.0.40
codegen_flags: <defaults>
</compile_context>

<pallas_src>
import functools

import jax
import jax.numpy as jnp
from jax.experimental import pallas as pl
from jax.experimental.pallas import tpu as pltpu

LANE = 128


def _round_up(x, m):
    return ((x + m - 1) // m) * m


def _pad2(x, rows, cols):
    r, c = x.shape
    if r == rows and c == cols:
        return x
    return jnp.pad(x, ((0, rows - r), (0, cols - c)))


# ---------------------------------------------------------------------------
# Kernel 1: tiled matmul  (M, K) @ (K, N) -> (M, N), bf16 inputs, f32 accumulate
# ---------------------------------------------------------------------------
def _matmul_kernel(x_ref, w_ref, o_ref, acc_ref):
    @pl.when(pl.program_id(2) == 0)
    def _():
        acc_ref[...] = jnp.zeros_like(acc_ref)

    acc_ref[...] += jnp.dot(x_ref[...], w_ref[...],
                            preferred_element_type=jnp.float32)

    @pl.when(pl.program_id(2) == pl.num_programs(2) - 1)
    def _():
        o_ref[...] = acc_ref[...].astype(o_ref.dtype)


def _tiled_matmul(x, w, *, tm, tn, tk, out_dtype):
    M, K = x.shape
    K2, N = w.shape
    assert K == K2 and M % tm == 0 and N % tn == 0 and K % tk == 0
    return pl.pallas_call(
        _matmul_kernel,
        out_shape=jax.ShapeDtypeStruct((M, N), out_dtype),
        grid_spec=pltpu.PrefetchScalarGridSpec(
            num_scalar_prefetch=0,
            grid=(M // tm, N // tn, K // tk),
            in_specs=[
                pl.BlockSpec((tm, tk), lambda i, j, k: (i, k)),
                pl.BlockSpec((tk, tn), lambda i, j, k: (k, j)),
            ],
            out_specs=pl.BlockSpec((tm, tn), lambda i, j, k: (i, j)),
            scratch_shapes=[pltpu.VMEM((tm, tn), jnp.float32)],
        ),
        compiler_params=pltpu.CompilerParams(
            dimension_semantics=("parallel", "parallel", "arbitrary"),
            vmem_limit_bytes=32 * 1024 * 1024,
        ),
    )(x, w)


# ---------------------------------------------------------------------------
# Kernel 2: fused neighbor aggregation + ReLU + classifier projection + bias
#   grid = (B // tm, N // tk); the N axis is the reduction ("arbitrary")
# ---------------------------------------------------------------------------
def _sage_head_kernel(adj_ref, featp_ref, selfp_ref, wproj_ref, b_ref,
                      o_ref, acc_ref):
    k = pl.program_id(1)

    @pl.when(k == 0)
    def _():
        acc_ref[...] = jnp.zeros_like(acc_ref)

    # mean-aggregated, already-projected neighbor part: (tm, tk) @ (tk, E)
    acc_ref[...] += jnp.dot(adj_ref[...], featp_ref[...],
                            preferred_element_type=jnp.float32)

    @pl.when(k == pl.num_programs(1) - 1)
    def _():
        # embeds = ReLU(self_part + neigh_part)   (concat-as-sum, f32 accumulator)
        emb = jnp.maximum(acc_ref[...] + selfp_ref[...].astype(jnp.float32), 0.0)
        # hiddens = embeds @ W_proj.T + b   (lane-dense padded class dim)
        out = jnp.dot(emb.astype(wproj_ref.dtype), wproj_ref[...],
                      preferred_element_type=jnp.float32)
        o_ref[...] = (out + b_ref[...]).astype(o_ref.dtype)


def _sage_head(adj, feat_proj, self_proj, w_proj_t, bias, *, tm, tk):
    Bp, Np = adj.shape
    Np2, Ep = feat_proj.shape
    Ep2, Cp = w_proj_t.shape
    assert Np == Np2 and Ep == Ep2
    assert Bp % tm == 0 and Np % tk == 0
    return pl.pallas_call(
        _sage_head_kernel,
        out_shape=jax.ShapeDtypeStruct((Bp, Cp), jnp.float32),
        grid_spec=pltpu.PrefetchScalarGridSpec(
            num_scalar_prefetch=0,
            grid=(Bp // tm, Np // tk),
            in_specs=[
                pl.BlockSpec((tm, tk), lambda i, k: (i, k)),   # adj rows
                pl.BlockSpec((tk, Ep), lambda i, k: (k, 0)),   # projected features
                pl.BlockSpec((tm, Ep), lambda i, k: (i, 0)),   # projected self feats
                pl.BlockSpec((Ep, Cp), lambda i, k: (0, 0)),   # W_proj.T (padded)
                pl.BlockSpec((1, Cp), lambda i, k: (0, 0)),    # bias (padded)
            ],
            out_specs=pl.BlockSpec((tm, Cp), lambda i, k: (i, 0)),
            scratch_shapes=[pltpu.VMEM((tm, Ep), jnp.float32)],
        ),
        compiler_params=pltpu.CompilerParams(
            dimension_semantics=("parallel", "arbitrary"),
            vmem_limit_bytes=32 * 1024 * 1024,
        ),
    )(adj, feat_proj, self_proj, w_proj_t, bias)


@functools.partial(jax.jit,
                   static_argnames=("tm_mm", "tk_mm", "tm_agg", "tk_agg"))
def graphsage_classifier_forward(features, adj_norm, node_ids,
                                 w_enc, w_proj, b_proj,
                                 *, tm_mm=128, tk_mm=256, tm_agg=64, tk_agg=128):
    N, F = features.shape
    B = node_ids.shape[0]
    E = w_enc.shape[0]
    C = w_proj.shape[0]
    assert w_enc.shape == (E, 2 * F)

    # Split the encoder weight: concat([self, neigh]) @ W_enc.T ==
    # self @ W_enc[:, :F].T + neigh @ W_enc[:, F:].T  (matches torch.cat order).
    w_self_t = jnp.transpose(w_enc[:, :F])    # (F, E)
    w_neigh_t = jnp.transpose(w_enc[:, F:])   # (F, E)

    # Gather of self features is glue, done in JAX.
    # TODO(synk): neighbor *sampling* from the Python adjacency dict has no Pallas
    # equivalent; the wrapper receives a pre-normalized (mean) adjacency instead.
    self_feats = jnp.take(features, node_ids, axis=0)       # (B, F)

    # Tile/lane friendly padded sizes (zero padding keeps the math exact).
    Fp = _round_up(F, tk_mm)
    Np = _round_up(N, max(tm_mm, tk_agg))
    Bp = _round_up(B, max(tm_mm, tm_agg))
    Ep = _round_up(E, LANE)
    Cp = _round_up(C, LANE)

    bf = jnp.bfloat16
    feats_bf = _pad2(features, Np, Fp).astype(bf)
    self_bf = _pad2(self_feats, Bp, Fp).astype(bf)
    adj_bf = _pad2(adj_norm, Bp, Np).astype(bf)
    w_self_bf = _pad2(w_self_t, Fp, Ep).astype(bf)
    w_neigh_bf = _pad2(w_neigh_t, Fp, Ep).astype(bf)
    w_proj_t_bf = _pad2(jnp.transpose(w_proj), Ep, Cp).astype(bf)
    bias_f32 = _pad2(b_proj.reshape(1, C).astype(jnp.float32), 1, Cp)

    # Reassociated neighbor path: project the feature table once, then aggregate.
    feat_proj = _tiled_matmul(feats_bf, w_neigh_bf,
                              tm=tm_mm, tn=Ep, tk=tk_mm, out_dtype=bf)           # (Np, Ep)
    self_proj = _tiled_matmul(self_bf, w_self_bf,
                              tm=tm_mm, tn=Ep, tk=tk_mm, out_dtype=jnp.float32)  # (Bp, Ep)

    hiddens_p = _sage_head(adj_bf, feat_proj, self_proj, w_proj_t_bf, bias_f32,
                           tm=tm_agg, tk=tk_agg)                                  # (Bp, Cp)
    return hiddens_p[:B, :C]


if __name__ == "__main__":
    key = jax.random.PRNGKey(0)
    k_feat, k_adj, k_nodes, k_enc, k_proj, k_bias = jax.random.split(key, 6)

    # Small Cora-like shapes.
    N, F, E, C, B = 200, 500, 64, 7, 100

    features = jax.random.normal(k_feat, (N, F), dtype=jnp.float32)

    # Random sparse graph (avg degree ~5); row-normalized mean-aggregation
    # adjacency for the batch, degree clamped to >= 1 (no NaNs for isolated nodes).
    adj = (jax.random.uniform(k_adj, (N, N)) < (5.0 / N)).astype(jnp.float32)
    node_ids = jax.random.randint(k_nodes, (B,), 0, N)
    adj_batch = jnp.take(adj, node_ids, axis=0)                  # (B, N)
    deg = jnp.maximum(adj_batch.sum(axis=1, keepdims=True), 1.0)
    adj_norm = adj_batch / deg

    w_enc = 0.1 * jax.random.normal(k_enc, (E, 2 * F), dtype=jnp.float32)
    w_proj = 0.1 * jax.random.normal(k_proj, (C, E), dtype=jnp.float32)
    b_proj = 0.1 * jax.random.normal(k_bias, (C,), dtype=jnp.float32)

    hiddens = graphsage_classifier_forward(features, adj_norm, node_ids,
                                           w_enc, w_proj, b_proj)
    hiddens = jax.block_until_ready(hiddens)

    # Pure-JAX f32 reference of the original PyTorch math.
    self_feats = jnp.take(features, node_ids, axis=0)
    neigh = adj_norm @ features
    embeds = jax.nn.relu(jnp.concatenate([self_feats, neigh], axis=1) @ w_enc.T)
    ref = embeds @ w_proj.T + b_proj

    assert hiddens.shape == (B, C)
    err = float(jnp.max(jnp.abs(hiddens - ref)))
    # bf16 MXU inputs with f32 accumulation -> small numerical difference allowed.
    assert err < 0.15, f"max abs error too large: {err}"
    print("KERNEL_OK")
</pallas_src>

<mosaic_0001>
module attributes {stable_mosaic.version = 11 : i64} {
  func.func @_matmul_kernel(%arg0: i32, %arg1: i32, %arg2: i32, %arg3: memref<128x256xbf16, #tpu.memory_space<vmem>>, %arg4: memref<256x128xbf16, #tpu.memory_space<vmem>>, %arg5: memref<128x128xbf16, #tpu.memory_space<vmem>>, %arg6: memref<128x128xf32, #tpu.memory_space<vmem>>) attributes {dimension_semantics = [#tpu.dimension_semantics<parallel>, #tpu.dimension_semantics<parallel>, #tpu.dimension_semantics<arbitrary>], iteration_bounds = array<i64: 2, 1, 2>, scalar_prefetch = 0 : i64, scratch_operands = 1 : i64, tpu.core_type = #tpu.core_type<tc>, window_params = [{transform_indices = @transform_0, window_bounds = array<i64: 128, 256>}, {transform_indices = @transform_1, window_bounds = array<i64: 256, 128>}, {transform_indices = @transform_2, window_bounds = array<i64: 128, 128>}]} {
    %c0_i32 = arith.constant 0 : i32
    %0 = arith.cmpi eq, %arg2, %c0_i32 : i32
    %1 = arith.extui %0 : i1 to i32
    %c0_i32_0 = arith.constant 0 : i32
    %2 = arith.cmpi ne, %1, %c0_i32_0 : i32
    scf.if %2 {
      %cst_9 = arith.constant 0.000000e+00 : f32
      %12 = vector.broadcast %cst_9 : f32 to vector<128x128xf32>
      %c0_10 = arith.constant 0 : index
      %c0_11 = arith.constant 0 : index
      %13 = vector.load %arg6[%c0_10, %c0_11] : memref<128x128xf32, #tpu.memory_space<vmem>>, vector<128x128xf32>
      tpu.vector_store %arg6[%c0_10, %c0_11], %12 {strides = array<i32>} : memref<128x128xf32, #tpu.memory_space<vmem>>, vector<128x128xf32>,
    } else {
    }
    %c0 = arith.constant 0 : index
    %c0_1 = arith.constant 0 : index
    %3 = vector.load %arg6[%c0, %c0_1] : memref<128x128xf32, #tpu.memory_space<vmem>>, vector<128x128xf32>
    %c0_2 = arith.constant 0 : index
    %c0_3 = arith.constant 0 : index
    %4 = vector.load %arg3[%c0_2, %c0_3] : memref<128x256xbf16, #tpu.memory_space<vmem>>, vector<128x256xbf16>
    %c0_4 = arith.constant 0 : index
    %c0_5 = arith.constant 0 : index
    %5 = vector.load %arg4[%c0_4, %c0_5] : memref<256x128xbf16, #tpu.memory_space<vmem>>, vector<256x128xbf16>
    %cst = arith.constant dense<0.000000e+00> : vector<128x128xf32>
    %6 = tpu.matmul %4, %5, %cst {dimension_numbers = #tpu.dot_dimension_numbers<[1], [0], [0], [1], [0, 0, 1, 1], [], []>} : vector<128x256xbf16>, vector<256x128xbf16>, vector<128x128xf32> -> vector<128x128xf32>
    %7 = arith.addf %3, %6 : vector<128x128xf32>
    %c0_6 = arith.constant 0 : index
    %c0_7 = arith.constant 0 : index
    %8 = vector.load %arg6[%c0_6, %c0_7] : memref<128x128xf32, #tpu.memory_space<vmem>>, vector<128x128xf32>
    tpu.vector_store %arg6[%c0_6, %c0_7], %7 {strides = array<i32>} : memref<128x128xf32, #tpu.memory_space<vmem>>, vector<128x128xf32>,
    %c1_i32 = arith.constant 1 : i32
    %9 = arith.cmpi eq, %arg2, %c1_i32 : i32
    %10 = arith.extui %9 : i1 to i32
    %c0_i32_8 = arith.constant 0 : i32
    %11 = arith.cmpi ne, %10, %c0_i32_8 : i32
    scf.if %11 {
      %c0_9 = arith.constant 0 : index
      %c0_10 = arith.constant 0 : index
      %12 = vector.load %arg6[%c0_9, %c0_10] : memref<128x128xf32, #tpu.memory_space<vmem>>, vector<128x128xf32>
      %13 = arith.truncf %12 : vector<128x128xf32> to vector<128x128xbf16>
      %c0_11 = arith.constant 0 : index
      %c0_12 = arith.constant 0 : index
      %14 = vector.load %arg5[%c0_11, %c0_12] : memref<128x128xbf16, #tpu.memory_space<vmem>>, vector<128x128xbf16>
      tpu.vector_store %arg5[%c0_11, %c0_12], %13 {strides = array<i32>} : memref<128x128xbf16, #tpu.memory_space<vmem>>, vector<128x128xbf16>,
    } else {
    }
    return
  }
  func.func @transform_0(%arg0: i32, %arg1: i32, %arg2: i32) -> (i32, i32) {
    %c0_i32 = arith.constant 0 : i32
    return %arg0, %arg2 : i32, i32
  }
  func.func @transform_1(%arg0: i32, %arg1: i32, %arg2: i32) -> (i32, i32) {
    %c0_i32 = arith.constant 0 : i32
    return %arg2, %arg1 : i32, i32
  }
  func.func @transform_2(%arg0: i32, %arg1: i32, %arg2: i32) -> (i32, i32) {
    %c0_i32 = arith.constant 0 : i32
    return %arg0, %arg1 : i32, i32
  }
}

module attributes {stable_mosaic.version = 11 : i64} {
  func.func @_matmul_kernel(%arg0: i32, %arg1: i32, %arg2: i32, %arg3: memref<128x256xbf16, #tpu.memory_space<vmem>>, %arg4: memref<256x128xbf16, #tpu.memory_space<vmem>>, %arg5: memref<128x128xf32, #tpu.memory_space<vmem>>, %arg6: memref<128x128xf32, #tpu.memory_space<vmem>>) attributes {dimension_semantics = [#tpu.dimension_semantics<parallel>, #tpu.dimension_semantics<parallel>, #tpu.dimension_semantics<arbitrary>], iteration_bounds = array<i64: 1, 1, 2>, scalar_prefetch = 0 : i64, scratch_operands = 1 : i64, tpu.core_type = #tpu.core_type<tc>, window_params = [{transform_indices = @transform_0, window_bounds = array<i64: 128, 256>}, {transform_indices = @transform_1, window_bounds = array<i64: 256, 128>}, {transform_indices = @transform_2, window_bounds = array<i64: 128, 128>}]} {
    %c0_i32 = arith.constant 0 : i32
    %0 = arith.cmpi eq, %arg2, %c0_i32 : i32
    %1 = arith.extui %0 : i1 to i32
    %c0_i32_0 = arith.constant 0 : i32
    %2 = arith.cmpi ne, %1, %c0_i32_0 : i32
    scf.if %2 {
      %cst_9 = arith.constant 0.000000e+00 : f32
      %12 = vector.broadcast %cst_9 : f32 to vector<128x128xf32>
      %c0_10 = arith.constant 0 : index
      %c0_11 = arith.constant 0 : index
      %13 = vector.load %arg6[%c0_10, %c0_11] : memref<128x128xf32, #tpu.memory_space<vmem>>, vector<128x128xf32>
      tpu.vector_store %arg6[%c0_10, %c0_11], %12 {strides = array<i32>} : memref<128x128xf32, #tpu.memory_space<vmem>>, vector<128x128xf32>,
    } else {
    }
    %c0 = arith.constant 0 : index
    %c0_1 = arith.constant 0 : index
    %3 = vector.load %arg6[%c0, %c0_1] : memref<128x128xf32, #tpu.memory_space<vmem>>, vector<128x128xf32>
    %c0_2 = arith.constant 0 : index
    %c0_3 = arith.constant 0 : index
    %4 = vector.load %arg3[%c0_2, %c0_3] : memref<128x256xbf16, #tpu.memory_space<vmem>>, vector<128x256xbf16>
    %c0_4 = arith.constant 0 : index
    %c0_5 = arith.constant 0 : index
    %5 = vector.load %arg4[%c0_4, %c0_5] : memref<256x128xbf16, #tpu.memory_space<vmem>>, vector<256x128xbf16>
    %cst = arith.constant dense<0.000000e+00> : vector<128x128xf32>
    %6 = tpu.matmul %4, %5, %cst {dimension_numbers = #tpu.dot_dimension_numbers<[1], [0], [0], [1], [0, 0, 1, 1], [], []>} : vector<128x256xbf16>, vector<256x128xbf16>, vector<128x128xf32> -> vector<128x128xf32>
    %7 = arith.addf %3, %6 : vector<128x128xf32>
    %c0_6 = arith.constant 0 : index
    %c0_7 = arith.constant 0 : index
    %8 = vector.load %arg6[%c0_6, %c0_7] : memref<128x128xf32, #tpu.memory_space<vmem>>, vector<128x128xf32>
    tpu.vector_store %arg6[%c0_6, %c0_7], %7 {strides = array<i32>} : memref<128x128xf32, #tpu.memory_space<vmem>>, vector<128x128xf32>,
    %c1_i32 = arith.constant 1 : i32
    %9 = arith.cmpi eq, %arg2, %c1_i32 : i32
    %10 = arith.extui %9 : i1 to i32
    %c0_i32_8 = arith.constant 0 : i32
    %11 = arith.cmpi ne, %10, %c0_i32_8 : i32
    scf.if %11 {
      %c0_9 = arith.constant 0 : index
      %c0_10 = arith.constant 0 : index
      %12 = vector.load %arg6[%c0_9, %c0_10] : memref<128x128xf32, #tpu.memory_space<vmem>>, vector<128x128xf32>
      %c0_11 = arith.constant 0 : index
      %c0_12 = arith.constant 0 : index
      %13 = vector.load %arg5[%c0_11, %c0_12] : memref<128x128xf32, #tpu.memory_space<vmem>>, vector<128x128xf32>
      tpu.vector_store %arg5[%c0_11, %c0_12], %12 {strides = array<i32>} : memref<128x128xf32, #tpu.memory_space<vmem>>, vector<128x128xf32>,
    } else {
    }
    return
  }
  func.func @transform_0(%arg0: i32, %arg1: i32, %arg2: i32) -> (i32, i32) {
    %c0_i32 = arith.constant 0 : i32
    return %arg0, %arg2 : i32, i32
  }
  func.func @transform_1(%arg0: i32, %arg1: i32, %arg2: i32) -> (i32, i32) {
    %c0_i32 = arith.constant 0 : i32
    return %arg2, %arg1 : i32, i32
  }
  func.func @transform_2(%arg0: i32, %arg1: i32, %arg2: i32) -> (i32, i32) {
    %c0_i32 = arith.constant 0 : i32
    return %arg0, %arg1 : i32, i32
  }
}

module attributes {stable_mosaic.version = 11 : i64} {
  func.func @_sage_head_kernel(%arg0: i32, %arg1: i32, %arg2: memref<64x128xbf16, #tpu.memory_space<vmem>>, %arg3: memref<128x128xbf16, #tpu.memory_space<vmem>>, %arg4: memref<64x128xf32, #tpu.memory_space<vmem>>, %arg5: memref<128x128xbf16, #tpu.memory_space<vmem>>, %arg6: memref<1x128xf32, #tpu.memory_space<vmem>>, %arg7: memref<64x128xf32, #tpu.memory_space<vmem>>, %arg8: memref<64x128xf32, #tpu.memory_space<vmem>>) attributes {dimension_semantics = [#tpu.dimension_semantics<parallel>, #tpu.dimension_semantics<arbitrary>], iteration_bounds = array<i64: 2, 2>, scalar_prefetch = 0 : i64, scratch_operands = 1 : i64, tpu.core_type = #tpu.core_type<tc>, window_params = [{transform_indices = @transform_0, window_bounds = array<i64: 64, 128>}, {transform_indices = @transform_1, window_bounds = array<i64: 128, 128>}, {transform_indices = @transform_2, window_bounds = array<i64: 64, 128>}, {pipeline_mode = #tpu.pipeline_mode<synchronous>, transform_indices = @transform_3, window_bounds = array<i64: 128, 128>}, {pipeline_mode = #tpu.pipeline_mode<synchronous>, transform_indices = @transform_4, window_bounds = array<i64: 1, 128>}, {transform_indices = @transform_5, window_bounds = array<i64: 64, 128>}]} {
    %c0_i32 = arith.constant 0 : i32
    %0 = arith.cmpi eq, %arg1, %c0_i32 : i32
    %1 = arith.extui %0 : i1 to i32
    %c0_i32_0 = arith.constant 0 : i32
    %2 = arith.cmpi ne, %1, %c0_i32_0 : i32
    scf.if %2 {
      %cst_9 = arith.constant 0.000000e+00 : f32
      %12 = vector.broadcast %cst_9 : f32 to vector<64x128xf32>
      %c0_10 = arith.constant 0 : index
      %c0_11 = arith.constant 0 : index
      %13 = vector.load %arg8[%c0_10, %c0_11] : memref<64x128xf32, #tpu.memory_space<vmem>>, vector<64x128xf32>
      tpu.vector_store %arg8[%c0_10, %c0_11], %12 {strides = array<i32>} : memref<64x128xf32, #tpu.memory_space<vmem>>, vector<64x128xf32>,
    } else {
    }
    %c0 = arith.constant 0 : index
    %c0_1 = arith.constant 0 : index
    %3 = vector.load %arg8[%c0, %c0_1] : memref<64x128xf32, #tpu.memory_space<vmem>>, vector<64x128xf32>
    %c0_2 = arith.constant 0 : index
    %c0_3 = arith.constant 0 : index
    %4 = vector.load %arg2[%c0_2, %c0_3] : memref<64x128xbf16, #tpu.memory_space<vmem>>, vector<64x128xbf16>
    %c0_4 = arith.constant 0 : index
    %c0_5 = arith.constant 0 : index
    %5 = vector.load %arg3[%c0_4, %c0_5] : memref<128x128xbf16, #tpu.memory_space<vmem>>, vector<128x128xbf16>
    %cst = arith.constant dense<0.000000e+00> : vector<64x128xf32>
    %6 = tpu.matmul %4, %5, %cst {dimension_numbers = #tpu.dot_dimension_numbers<[1], [0], [0], [1], [0, 0, 1, 1], [], []>} : vector<64x128xbf16>, vector<128x128xbf16>, vector<64x128xf32> -> vector<64x128xf32>
    %7 = arith.addf %3, %6 : vector<64x128xf32>
    %c0_6 = arith.constant 0 : index
    %c0_7 = arith.constant 0 : index
    %8 = vector.load %arg8[%c0_6, %c0_7] : memref<64x128xf32, #tpu.memory_space<vmem>>, vector<64x128xf32>
    tpu.vector_store %arg8[%c0_6, %c0_7], %7 {strides = array<i32>} : memref<64x128xf32, #tpu.memory_space<vmem>>, vector<64x128xf32>,
    %c1_i32 = arith.constant 1 : i32
    %9 = arith.cmpi eq, %arg1, %c1_i32 : i32
    %10 = arith.extui %9 : i1 to i32
    %c0_i32_8 = arith.constant 0 : i32
    %11 = arith.cmpi ne, %10, %c0_i32_8 : i32
    scf.if %11 {
      %c0_9 = arith.constant 0 : index
      %c0_10 = arith.constant 0 : index
      %12 = vector.load %arg8[%c0_9, %c0_10] : memref<64x128xf32, #tpu.memory_space<vmem>>, vector<64x128xf32>
      %c0_11 = arith.constant 0 : index
      %c0_12 = arith.constant 0 : index
      %13 = vector.load %arg4[%c0_11, %c0_12] : memref<64x128xf32, #tpu.memory_space<vmem>>, vector<64x128xf32>
      %14 = arith.addf %12, %13 : vector<64x128xf32>
      %cst_13 = arith.constant 0.000000e+00 : f32
      %15 = vector.broadcast %cst_13 : f32 to vector<64x128xf32>
      %16 = arith.maximumf %14, %15 : vector<64x128xf32>
      %17 = arith.truncf %16 : vector<64x128xf32> to vector<64x128xbf16>
      %c0_14 = arith.constant 0 : index
      %c0_15 = arith.constant 0 : index
      %18 = vector.load %arg5[%c0_14, %c0_15] : memref<128x128xbf16, #tpu.memory_space<vmem>>, vector<128x128xbf16>
      %cst_16 = arith.constant dense<0.000000e+00> : vector<64x128xf32>
      %19 = tpu.matmul %17, %18, %cst_16 {dimension_numbers = #tpu.dot_dimension_numbers<[1], [0], [0], [1], [0, 0, 1, 1], [], []>} : vector<64x128xbf16>, vector<128x128xbf16>, vector<64x128xf32> -> vector<64x128xf32>
      %c0_17 = arith.constant 0 : index
      %c0_18 = arith.constant 0 : index
      %20 = vector.load %arg6[%c0_17, %c0_18] : memref<1x128xf32, #tpu.memory_space<vmem>>, vector<1x128xf32>
      %21 = vector.broadcast %20 : vector<1x128xf32> to vector<64x128xf32>
      %22 = arith.addf %19, %21 : vector<64x128xf32>
      %c0_19 = arith.constant 0 : index
      %c0_20 = arith.constant 0 : index
      %23 = vector.load %arg7[%c0_19, %c0_20] : memref<64x128xf32, #tpu.memory_space<vmem>>, vector<64x128xf32>
      tpu.vector_store %arg7[%c0_19, %c0_20], %22 {strides = array<i32>} : memref<64x128xf32, #tpu.memory_space<vmem>>, vector<64x128xf32>,
    } else {
    }
    return
  }
  func.func @transform_0(%arg0: i32, %arg1: i32) -> (i32, i32) {
    %c0_i32 = arith.constant 0 : i32
    return %arg0, %arg1 : i32, i32
  }
  func.func @transform_1(%arg0: i32, %arg1: i32) -> (i32, i32) {
    %c0_i32 = arith.constant 0 : i32
    %c0_i32_0 = arith.constant 0 : i32
    return %arg1, %c0_i32 : i32, i32
  }
  func.func @transform_2(%arg0: i32, %arg1: i32) -> (i32, i32) {
    %c0_i32 = arith.constant 0 : i32
    %c0_i32_0 = arith.constant 0 : i32
    return %arg0, %c0_i32 : i32, i32
  }
  func.func @transform_3(%arg0: i32, %arg1: i32) -> (i32, i32) {
    %c0_i32 = arith.constant 0 : i32
    %c0_i32_0 = arith.constant 0 : i32
    %c0_i32_1 = arith.constant 0 : i32
    return %c0_i32, %c0_i32_0 : i32, i32
  }
  func.func @transform_4(%arg0: i32, %arg1: i32) -> (i32, i32) {
    %c0_i32 = arith.constant 0 : i32
    %c0_i32_0 = arith.constant 0 : i32
    %c0_i32_1 = arith.constant 0 : i32
    return %c0_i32, %c0_i32_0 : i32, i32
  }
  func.func @transform_5(%arg0: i32, %arg1: i32) -> (i32, i32) {
    %c0_i32 = arith.constant 0 : i32
    %c0_i32_0 = arith.constant 0 : i32
    return %arg0, %c0_i32 : i32, i32
  }
}

</mosaic_0001>

<bundles_post_ra>
// kernel: graphsage_classifier_forward.3
= control target key start
LH: loop header
LB: loop body
LE: loop exit
PB: predicated region body
PF: predicated region fallthrough
CT: control target
= control target key end

     0   :  { %s1227_s9 = smov 0   ;;  %s1229_s10 = smov 0   ;;  %s1401_s0 = inlined_call_operand.vmem [shape: bf16[256,512], index: 0, kind: input, shape index: {}]   ;;  %s1402_s1 = inlined_call_operand.vmem [shape: bf16[512,128], index: 1, kind: input, shape index: {}]   ;;  %s1403_s2 = inlined_call_operand.vmem [shape: bf16[256,128], index: 2, kind: output, shape index: {}]  }
   0x1   :  { %s1231_s11 = smov 0   ;;  %s1233_s12 = smov 0  }
   0x2   :  { %s1235_s13 = smov 0   ;;  %s1237_s14 = smov 0  }
   0x3   :  { %s1239_s15 = smov 0  }
   0x4 LB: > { %s24_s16 = sadd.s32 1, %s1201_s13  ;;  %s31_s17 = sadd.s32 1, %s1205_s14  ;;  %s1209_s15 = sphi %s1239_s15, %s12_s15   ;;  %s1205_s14 = sphi %s1237_s14, %s1409_s14   ;;  %s1201_s13 = sphi %s1235_s13, %s1408_s13   ;;  %s1197_s12 = sphi %s1233_s12, %s1407_s12   ;;  %s1193_s11 = sphi %s1231_s11, %s1406_s11   ;;  %s1189_s10 = sphi %s1229_s10, %s1405_s10   ;;  %s1185_s9 = sphi %s1227_s9, %s1404_s9  }
   0x5   : > { %p25_p0 = scmp.ge.s32.totalorder %s24_s16, 2  ;;  %p47_p1 = scmp.ne.s32.totalorder %s1189_s10, %s1185_s9 }
   0x6   : > { %p48_p2 = scmp.eq.s32.totalorder %s1209_s15, 0  ;;  %s40_s21 = sadd.s32 1, %s1189_s10 }
   0x7   : > { %s1411_s16 = smov (%p25_p0, %s24_s16), 0  ;;  %s1413_s17 = smov (!%p25_p0, %s31_s17), %s1205_s14 }
   0x8   : > { %p49_p3 = por %p48_p2, %p47_p1  ;;  %p33_p4 = scmp.ge.s32.totalorder %s1413_s17, 2 }
   0x9   : > { %s36_s18 = ssub.s32 %s1201_s13, %s1411_s16  ;;  %p858_p6 = scmp.ge.s32.totalorder %s1209_s15, 4 }
   0xa   : > { %s1415_s17 = smov (%p33_p4, %s1413_s17), 0 }
   0xb   : > { %s35_s19 = ssub.s32 %s1205_s14, %s1415_s17  ;;  %129 = sbr.rel (%p858_p6) target bundleno = 39 (0x27), region = 16 }
   0xc   : > { %s37_s20 = sor.u32 %s36_s18, %s35_s19 }
   0xd   : > { %p38_p5 = scmp.eq.s32.totalorder %s37_s20, 0 }
   0xf   : > { %s1278_s22 = scalar_select %p38_p5, %s1189_s10, %s40_s21  }
  0x10   : > { %132 = sbr.rel (!%p49_p3) target bundleno = 39 (0x27), region = 20  ;;  %s134_s23 = sand.u32 (%p49_p3), 1, %s1189_s10  }
  0x11   : > { %s861_s24 = sshll.u32 (%p49_p3), %s1201_s13, 1  ;;  %s859_s25 = sshll.u32 (%p49_p3), %s134_s23, 7 }
  0x12   : > { %s1002_s26 = sshll.u32 (%p49_p3), %s1205_s14, 6  ;;  %s136_s4 = scalar_lea.vmem (%p49_p3), [#allocation3], %s859_s25 }
  0x13   : > { %s140_s27 = sadd.s32 (%p49_p3), %s1002_s26, %s861_s24 }
  0x14   : > { %s863_s28 = sshll.u32 (%p49_p3), %s140_s27, 2 }
  0x15   : > { %s1287_s3 = scalar_lea.vmem %s1401_s0, %s863_s28 }
  0x16   : > { %v201_v0 = vld [vmem:[%s1287_s3] sm:$0xff]  ;;  %v203_v1 = vld [vmem:[%s1287_s3 + $0x10] sm:$0xff] }
  0x17   : > { %v205_v2 = vld [vmem:[%s1287_s3 + $0x20] sm:$0xff]  ;;  %202 = vst [vmem:[%s136_s4] sm:$0xff] %v201_v0  ;;  %v207_v3 = vld [vmem:[%s1287_s3 + $0x30] sm:$0xff] }
  0x18   : > { %204 = vst [vmem:[%s136_s4 + $0x8] sm:$0xff] %v203_v1  ;;  %v209_v4 = vld [vmem:[%s1287_s3 + $0x40] sm:$0xff]  ;;  %v211_v5 = vld [vmem:[%s1287_s3 + $0x50] sm:$0xff] }
  0x19   : > { %206 = vst [vmem:[%s136_s4 + $0x10] sm:$0xff] %v205_v2  ;;  %v213_v6 = vld [vmem:[%s1287_s3 + $0x60] sm:$0xff]  ;;  %v215_v7 = vld [vmem:[%s1287_s3 + $0x70] sm:$0xff] }
  0x1a   : > { %208 = vst [vmem:[%s136_s4 + $0x18] sm:$0xff] %v207_v3  ;;  %v217_v8 = vld [vmem:[%s1287_s3 + $0x80] sm:$0xff]  ;;  %v219_v9 = vld [vmem:[%s1287_s3 + $0x90] sm:$0xff] }
  0x1b   : > { %210 = vst [vmem:[%s136_s4 + $0x20] sm:$0xff] %v209_v4  ;;  %v221_v10 = vld [vmem:[%s1287_s3 + $0xa0] sm:$0xff]  ;;  %v223_v11 = vld [vmem:[%s1287_s3 + $0xb0] sm:$0xff] }
  0x1c   : > { %212 = vst [vmem:[%s136_s4 + $0x28] sm:$0xff] %v211_v5  ;;  %v225_v12 = vld [vmem:[%s1287_s3 + $0xc0] sm:$0xff]  ;;  %v227_v13 = vld [vmem:[%s1287_s3 + $0xd0] sm:$0xff] }
  0x1d   : > { %214 = vst [vmem:[%s136_s4 + $0x30] sm:$0xff] %v213_v6  ;;  %v229_v14 = vld [vmem:[%s1287_s3 + $0xe0] sm:$0xff]  ;;  %v231_v15 = vld [vmem:[%s1287_s3 + $0xf0] sm:$0xff] }
  0x1e   : > { %216 = vst [vmem:[%s136_s4 + $0x38] sm:$0xff] %v215_v7 }
  0x1f   : > { %218 = vst [vmem:[%s136_s4 + $0x40] sm:$0xff] %v217_v8 }
  0x20   : > { %220 = vst [vmem:[%s136_s4 + $0x48] sm:$0xff] %v219_v9 }
  0x21   : > { %222 = vst [vmem:[%s136_s4 + $0x50] sm:$0xff] %v221_v10 }
  0x22   : > { %224 = vst [vmem:[%s136_s4 + $0x58] sm:$0xff] %v223_v11 }
  0x23   : > { %226 = vst [vmem:[%s136_s4 + $0x60] sm:$0xff] %v225_v12 }
  0x24   : > { %228 = vst [vmem:[%s136_s4 + $0x68] sm:$0xff] %v227_v13 }
  0x25   : > { %230 = vst [vmem:[%s136_s4 + $0x70] sm:$0xff] %v229_v14 }
  0x26   : > { %232 = vst [vmem:[%s136_s4 + $0x78] sm:$0xff] %v231_v15 }
  0x27 PF: > { %p864_p7 = scmp.ge.s32.totalorder %s1209_s15, 1  ;;  %p249_p8 = scmp.lt.s32.totalorder %s1209_s15, 5 }
  0x29   : > { %p250_p9 = pnand %p864_p7, %p249_p8 }
  0x2a   : > { %s256_s5 = sand.u32 (!%p250_p9), 1, %s1185_s9   ;;  %s866_s6 = sshll.u32 (!%p250_p9), %s1193_s11, 5 }
  0x2b   : > { %253 = sbr.rel (%p250_p9) target bundleno = 310 (0x136), region = 62  ;;  %s865_s7 = sshll.u32 (!%p250_p9), %s256_s5, 7 }
  0x2c   : > { %p291_p10 = scmp.lt.s32.totalorder (!%p250_p9), %s866_s6, 63  ;;  %s868_s8 = sshll.u32 (!%p250_p9), %s1197_s12, 4 }
  0x2d   : > { %p300_p11 = scmp.lt.s32.totalorder (!%p250_p9), %s868_s8, 31  ;;  %s1320_s9 = scalar_lea.vmem (!%p250_p9), [#allocation3], %s865_s7 }
  0x2e   : > { %p870_p12 = scmp.ne.s32.totalorder (!%p250_p9), %s1193_s11, 0 }
  0x30   : > { %s1417_s6 = smov (!%p291_p10, %s866_s6), 63  ;;  %s1419_s8 = smov (!%p300_p11, %s868_s8), 31 }
  0x31   : > { %s867_s18 = sshll.u32 %s1417_s6, 2  ;;  %s869_s23 = sshll.u32 %s1419_s8, 2 }
  0x32   : > { %s1313_s21 = scalar_lea.vmem %s1402_s1, %s867_s18  ;;  %s1318_s26 = scalar_lea.vmem %s1403_s2, %s869_s23 }
  0x33   : > { %311 = sbr.rel (%p870_p12) target bundleno = 73 (0x49), region = 70 }
  0x38   : > { %v1211_v16 = vmov 0.0  }
  0x39   : > { %312 = vst [vmem:[#allocation2 + $0x30] sm:$0xff] %v1211_v16 }
  0x3a   : > { %313 = vst [vmem:[#allocation2] sm:$0xff] %v1211_v16 }
  0x3b   : > { %314 = vst [vmem:[#allocation2 + $0x58] sm:$0xff] %v1211_v16 }
  0x3c   : > { %315 = vst [vmem:[#allocation2 + $0x18] sm:$0xff] %v1211_v16 }
  0x3d   : > { %316 = vst [vmem:[#allocation2 + $0x50] sm:$0xff] %v1211_v16 }
  0x3e   : > { %317 = vst [vmem:[#allocation2 + $0x68] sm:$0xff] %v1211_v16 }
  0x3f   : > { %318 = vst [vmem:[#allocation2 + $0x8] sm:$0xff] %v1211_v16 }
  0x40   : > { %319 = vst [vmem:[#allocation2 + $0x48] sm:$0xff] %v1211_v16 }
  0x41   : > { %320 = vst [vmem:[#allocation2 + $0x40] sm:$0xff] %v1211_v16 }
  0x42   : > { %321 = vst [vmem:[#allocation2 + $0x20] sm:$0xff] %v1211_v16 }
  0x43   : > { %322 = vst [vmem:[#allocation2 + $0x10] sm:$0xff] %v1211_v16 }
  0x44   : > { %323 = vst [vmem:[#allocation2 + $0x38] sm:$0xff] %v1211_v16 }
  0x45   : > { %324 = vst [vmem:[#allocation2 + $0x60] sm:$0xff] %v1211_v16 }
  0x46   : > { %325 = vst [vmem:[#allocation2 + $0x70] sm:$0xff] %v1211_v16 }
  0x47   : > { %326 = vst [vmem:[#allocation2 + $0x78] sm:$0xff] %v1211_v16 }
  0x48   : > { %327 = vst [vmem:[#allocation2 + $0x28] sm:$0xff] %v1211_v16 }
  0x49 PF: > { %v1026_v17 = vld [vmem:[%s1313_s21 + $0x38] sm:$0xff]  ;;  %v1025_v19 = vld [vmem:[%s1313_s21 + $0x30] sm:$0xff]  ;;  %v1024_v21 = vld [vmem:[%s1313_s21 + $0x28] sm:$0xff]  ;;  %p999_p13 = scmp.ne.s32.totalorder %s1193_s11, 1 }
  0x4a   : > { %v1034_v18 = vld [vmem:[%s1313_s21 + $0x78] sm:$0xff]  ;;  %568 = vmatpush.bf16.msra.mxu0 %v1026_v17  ;;  %1082 = vmatpush.bf16.msra.mxu2 %v1026_v17  ;;  %v1033_v20 = vld [vmem:[%s1313_s21 + $0x70] sm:$0xff]  ;;  %v1032_v22 = vld [vmem:[%s1313_s21 + $0x68] sm:$0xff] }
  0x4b   : > { %617 = vmatpush.bf16.msra.mxu1 %v1034_v18  ;;  %1090 = vmatpush.bf16.msra.mxu3 %v1034_v18  ;;  %v1023_v23 = vld [vmem:[%s1313_s21 + $0x20] sm:$0xff]  ;;  %v1022_v25 = vld [vmem:[%s1313_s21 + $0x18] sm:$0xff]  ;;  %v1021_v27 = vld [vmem:[%s1313_s21 + $0x10] sm:$0xff] }
  0x4c   : > { %v1031_v24 = vld [vmem:[%s1313_s21 + $0x60] sm:$0xff]  ;;  %v1030_v26 = vld [vmem:[%s1313_s21 + $0x58] sm:$0xff]  ;;  %v1029_v28 = vld [vmem:[%s1313_s21 + $0x50] sm:$0xff] }
  0x4d   : > { %v1020_v29 = vld [vmem:[%s1313_s21 + $0x8] sm:$0xff]  ;;  %v1019_v31 = vld [vmem:[%s1313_s21] sm:$0xff]  ;;  %v881_v45 = vld [vmem:[%s1320_s9 + $0x10] sm:$0xf] }
  0x4e   : > { %569 = vmatpush.bf16.msra.mxu0 %v1025_v19  ;;  %1083 = vmatpush.bf16.msra.mxu2 %v1025_v19  ;;  %v1028_v30 = vld [vmem:[%s1313_s21 + $0x48] sm:$0xff]  ;;  %v1027_v32 = vld [vmem:[%s1313_s21 + $0x40] sm:$0xff]  ;;  %v1006_v46 = vld [vmem:[%s1320_s9 + $0x14] sm:$0xf0] }
  0x4f   : > { %618 = vmatpush.bf16.msra.mxu1 %v1033_v20  ;;  %1091 = vmatpush.bf16.msra.mxu3 %v1033_v20  ;;  %v873_v33 = vld [vmem:[%s1320_s9] sm:$0xf]  ;;  %v1004_v34 = vld [vmem:[%s1320_s9 + $0x4] sm:$0xf0]  ;;  %v1003_v37 = vld [vmem:[%s1320_s9 + $0x4] sm:$0xf]  ;;  %v882_v53 = vor.u32 %v1006_v46, %v881_v45 }
  0x50   : > { %v905_v35 = vld [vmem:[%s1320_s9 + $0x40] sm:$0xf]  ;;  %v1012_v36 = vld [vmem:[%s1320_s9 + $0x44] sm:$0xf0]  ;;  %v875_v38 = vld [vmem:[%s1320_s9 + $0x8] sm:$0xf0]  ;;  %v874_v41 = vor.u32 %v1004_v34, %v873_v33 }
  0x51   : > { %v1011_v39 = vld [vmem:[%s1320_s9 + $0x44] sm:$0xf]  ;;  %v907_v40 = vld [vmem:[%s1320_s9 + $0x48] sm:$0xf0]  ;;  %v906_v42 = vor.u32 %v1012_v36, %v905_v35  ;;  %v878_v43 = vor.u32 %v1003_v37, %v875_v38  ;;  %v913_v47 = vld [vmem:[%s1320_s9 + $0x50] sm:$0xf] }
  0x52   : > { %570 = vmatpush.bf16.msra.mxu0 %v1024_v21  ;;  %1084 = vmatpush.bf16.msra.mxu2 %v1024_v21  ;;  %v910_v44 = vor.u32 %v1011_v39, %v907_v40  ;;  %v1014_v48 = vld [vmem:[%s1320_s9 + $0x54] sm:$0xf0]  ;;  %v1005_v49 = vld [vmem:[%s1320_s9 + $0x14] sm:$0xf]  ;;  %v883_v50 = vld [vmem:[%s1320_s9 + $0x18] sm:$0xf0] }
  0x53   : > { %619 = vmatpush.bf16.msra.mxu1 %v1032_v22  ;;  %1092 = vmatpush.bf16.msra.mxu3 %v1032_v22  ;;  %v1013_v51 = vld [vmem:[%s1320_s9 + $0x54] sm:$0xf]  ;;  %v915_v52 = vld [vmem:[%s1320_s9 + $0x58] sm:$0xf0]  ;;  %v914_v54 = vor.u32 %v1014_v48, %v913_v47  ;;  %v886_v55 = vor.u32 %v1005_v49, %v883_v50  ;;  %v889_v57 = vld [vmem:[%s1320_s9 + $0x20] sm:$0xf] }
  0x54   : > { %v918_v56 = vor.u32 %v1013_v51, %v915_v52  ;;  %v1008_v58 = vld [vmem:[%s1320_s9 + $0x24] sm:$0xf0]  ;;  %v921_v59 = vld [vmem:[%s1320_s9 + $0x60] sm:$0xf]  ;;  %v1007_v61 = vld [vmem:[%s1320_s9 + $0x24] sm:$0xf] }
  0x55   : > { %v1016_v60 = vld [vmem:[%s1320_s9 + $0x64] sm:$0xf0]  ;;  %v891_v62 = vld [vmem:[%s1320_s9 + $0x28] sm:$0xf0]  ;;  %v1015_v63 = vld [vmem:[%s1320_s9 + $0x64] sm:$0xf]  ;;  %v890_v1 = vor.u32 %v1008_v58, %v889_v57 }
  0x56   : > { %571 = vmatpush.bf16.msra.mxu0 %v1023_v23  ;;  %1085 = vmatpush.bf16.msra.mxu2 %v1023_v23  ;;  %v923_v0 = vld [vmem:[%s1320_s9 + $0x68] sm:$0xf0]  ;;  %v922_v2 = vor.u32 %v1016_v60, %v921_v59  ;;  %v894_v3 = vor.u32 %v1007_v61, %v891_v62  ;;  %v897_v5 = vld [vmem:[%s1320_s9 + $0x30] sm:$0xf]  ;;  %v1010_v6 = vld [vmem:[%s1320_s9 + $0x34] sm:$0xf0] }
  0x57   : > { %620 = vmatpush.bf16.msra.mxu1 %v1031_v24  ;;  %1093 = vmatpush.bf16.msra.mxu3 %v1031_v24  ;;  %v926_v4 = vor.u32 %v1015_v63, %v923_v0  ;;  %v929_v7 = vld [vmem:[%s1320_s9 + $0x70] sm:$0xf]  ;;  %v1018_v8 = vld [vmem:[%s1320_s9 + $0x74] sm:$0xf0]  ;;  %v1009_v9 = vld [vmem:[%s1320_s9 + $0x34] sm:$0xf]  ;;  %v898_v13 = vor.u32 %v1010_v6, %v897_v5 }
  0x58   : > { %v899_v10 = vld [vmem:[%s1320_s9 + $0x38] sm:$0xf0]  ;;  %v1017_v11 = vld [vmem:[%s1320_s9 + $0x74] sm:$0xf]  ;;  %v930_v14 = vor.u32 %v1018_v8, %v929_v7  ;;  %v336_v23 = vld [vmem:[#allocation2 + $0x40] sm:$0xff] }
  0x59   : > { %v931_v12 = vld [vmem:[%s1320_s9 + $0x78] sm:$0xf0]  ;;  %v902_v15 = vor.u32 %v1009_v9, %v899_v10  ;;  %v328_v18 = vld [vmem:[#allocation2 + $0x30] sm:$0xff]  ;;  %v337_v33 = vld [vmem:[#allocation2 + $0x20] sm:$0xff] }
  0x5a   : > { %572 = vmatpush.bf16.msra.mxu0 %v1022_v25  ;;  %1086 = vmatpush.bf16.msra.mxu2 %v1022_v25  ;;  %v934_v16 = vor.u32 %v1017_v11, %v931_v12  ;;  %v330_v37 = vld [vmem:[#allocation2 + $0x58] sm:$0xff]  ;;  %v332_v57 = vld [vmem:[#allocation2 + $0x50] sm:$0xff]  ;;  %v340_v63 = vld [vmem:[#allocation2 + $0x60] sm:$0xff] }
  0x5b   : > { %621 = vmatpush.bf16.msra.mxu1 %v1030_v26  ;;  %1094 = vmatpush.bf16.msra.mxu3 %v1030_v26  ;;  %v331_v47 = vld [vmem:[#allocation2 + $0x18] sm:$0xff]  ;;  %v341_v9 = vld [vmem:[#allocation2 + $0x70] sm:$0xff] }
  0x5e   : > { %573 = vmatpush.bf16.msra.mxu0 %v1021_v27  ;;  %1087 = vmatpush.bf16.msra.mxu2 %v1021_v27  ;;  %v329_v27 = vld [vmem:[#allocation2] sm:$0xff] }
  0x5f   : > { %622 = vmatpush.bf16.msra.mxu1 %v1029_v28  ;;  %1095 = vmatpush.bf16.msra.mxu3 %v1029_v28 }
  0x62   : > { %574 = vmatpush.bf16.msra.mxu0 %v1020_v29  ;;  %1088 = vmatpush.bf16.msra.mxu2 %v1020_v29 }
  0x63   : > { %623 = vmatpush.bf16.msra.mxu1 %v1028_v30  ;;  %1096 = vmatpush.bf16.msra.mxu3 %v1028_v30 }
  0x66   : > { %575 = vmatpush.bf16.msra.mxu0 %v1019_v31  ;;  %1089 = vmatpush.bf16.msra.mxu2 %v1019_v31 }
  0x67   : > { %624 = vmatpush.bf16.msra.mxu1 %v1027_v32  ;;  %1097 = vmatpush.bf16.msra.mxu3 %v1027_v32 }
  0x69   : > { %576 = vmatmul.bf16.vlgmr.msra.gmra.mxu0 %v874_v41  ;;  %596 = vmatmul.bf16.vlgmr.msra.gmra.mxu2 %v906_v42 }
  0x6a   : > { %625 = vmatmul.bf16.vlgmr.msra.gmra.mxu1 %v878_v43  ;;  %645 = vmatmul.bf16.vlgmr.msra.gmra.mxu3 %v910_v44  ;;  %v338_v43 = vld [vmem:[#allocation2 + $0x10] sm:$0xff] }
  0x79   : > { %581 = vmatmul.bf16.gmra.mxu0 %v882_v53  ;;  %601 = vmatmul.bf16.gmra.mxu2 %v914_v54  ;;  %v339_v53 = vld [vmem:[#allocation2 + $0x38] sm:$0xff] }
  0x7a   : > { %630 = vmatmul.bf16.gmra.mxu1 %v886_v55  ;;  %650 = vmatmul.bf16.gmra.mxu3 %v918_v56 }
  0x89   : > { %586 = vmatmul.bf16.gmra.mxu0 %v890_v1  ;;  %606 = vmatmul.bf16.gmra.mxu2 %v922_v2 }
  0x8a   : > { %635 = vmatmul.bf16.gmra.mxu1 %v894_v3  ;;  %655 = vmatmul.bf16.gmra.mxu3 %v926_v4  ;;  %v333_v3 = vld [vmem:[#allocation2 + $0x68] sm:$0xff] }
  0x99   : > { %591 = vmatmul.bf16.gmra.mxu0 %v898_v13  ;;  %611 = vmatmul.bf16.gmra.mxu2 %v930_v14  ;;  %v334_v13 = vld [vmem:[#allocation2 + $0x8] sm:$0xff] }
  0x9a   : > { %640 = vmatmul.bf16.gmra.mxu1 %v902_v15  ;;  %660 = vmatmul.bf16.gmra.mxu3 %v934_v16 }
  0xe6   : > { %v577_v17 = vpop.f32.mrf.mxu0 }
  0xe7   : > { %v626_v19 = vpop.f32.mrf.mxu1 }
  0xe8   : > { %v627_v20 = vadd.f32 %v626_v19, %v577_v17  ;;  %v342_v19 = vld [vmem:[#allocation2 + $0x78] sm:$0xff] }
  0xea   : > { %v666_v21 = vadd.f32 %v627_v20, %v328_v18 }
  0xec   : > { %682 = vst [vmem:[#allocation2 + $0x30] sm:$0xff] %v666_v21  ;;  %v597_v22 = vpop.f32.mrf.mxu2 }
  0xed   : > { %v646_v24 = vpop.f32.mrf.mxu3 }
  0xee   : > { %v647_v25 = vadd.f32 %v646_v24, %v597_v22  ;;  %v579_v26 = vpop.f32.mrf.mxu0 }
  0xef   : > { %v628_v28 = vpop.f32.mrf.mxu1 }
  0xf0   : > { %v674_v29 = vadd.f32 %v647_v25, %v336_v23  ;;  %v629_v30 = vadd.f32 %v628_v28, %v579_v26  ;;  %v335_v23 = vld [vmem:[#allocation2 + $0x48] sm:$0xff] }
  0xf2   : > { %690 = vst [vmem:[#allocation2 + $0x40] sm:$0xff] %v674_v29  ;;  %v667_v31 = vadd.f32 %v629_v30, %v329_v27  ;;  %v343_v29 = vld [vmem:[#allocation2 + $0x28] sm:$0xff] }
  0xf4   : > { %683 = vst [vmem:[#allocation2] sm:$0xff] %v667_v31  ;;  %v599_v32 = vpop.f32.mrf.mxu2 }
  0xf5   : > { %v648_v34 = vpop.f32.mrf.mxu3 }
  0xf6   : > { %v649_v35 = vadd.f32 %v648_v34, %v599_v32  ;;  %v582_v36 = vpop.f32.mrf.mxu0 }
  0xf7   : > { %v631_v38 = vpop.f32.mrf.mxu1 }
  0xf8   : > { %v675_v39 = vadd.f32 %v649_v35, %v337_v33  ;;  %v632_v40 = vadd.f32 %v631_v38, %v582_v36 }
  0xfa   : > { %691 = vst [vmem:[#allocation2 + $0x20] sm:$0xff] %v675_v39  ;;  %v668_v41 = vadd.f32 %v632_v40, %v330_v37 }
  0xfc   : > { %684 = vst [vmem:[#allocation2 + $0x58] sm:$0xff] %v668_v41  ;;  %v602_v42 = vpop.f32.mrf.mxu2 }
  0xfd   : > { %v651_v44 = vpop.f32.mrf.mxu3 }
  0xfe   : > { %v652_v45 = vadd.f32 %v651_v44, %v602_v42  ;;  %v584_v46 = vpop.f32.mrf.mxu0 }
  0xff   : > { %v633_v48 = vpop.f32.mrf.mxu1 }
 0x100   : > { %v676_v49 = vadd.f32 %v652_v45, %v338_v43  ;;  %v634_v50 = vadd.f32 %v633_v48, %v584_v46 }
 0x102   : > { %692 = vst [vmem:[#allocation2 + $0x10] sm:$0xff] %v676_v49  ;;  %v669_v51 = vadd.f32 %v634_v50, %v331_v47 }
 0x104   : > { %685 = vst [vmem:[#allocation2 + $0x18] sm:$0xff] %v669_v51  ;;  %v604_v52 = vpop.f32.mrf.mxu2 }
 0x105   : > { %v653_v54 = vpop.f32.mrf.mxu3 }
 0x106   : > { %v654_v55 = vadd.f32 %v653_v54, %v604_v52  ;;  %v587_v56 = vpop.f32.mrf.mxu0 }
 0x107   : > { %v636_v58 = vpop.f32.mrf.mxu1 }
 0x108   : > { %v677_v59 = vadd.f32 %v654_v55, %v339_v53  ;;  %v637_v60 = vadd.f32 %v636_v58, %v587_v56 }
 0x10a   : > { %693 = vst [vmem:[#allocation2 + $0x38] sm:$0xff] %v677_v59  ;;  %v670_v61 = vadd.f32 %v637_v60, %v332_v57 }
 0x10c   : > { %686 = vst [vmem:[#allocation2 + $0x50] sm:$0xff] %v670_v61  ;;  %v607_v62 = vpop.f32.mrf.mxu2 }
 0x10d   : > { %v656_v0 = vpop.f32.mrf.mxu3 }
 0x10e   : > { %v657_v1 = vadd.f32 %v656_v0, %v607_v62  ;;  %v589_v2 = vpop.f32.mrf.mxu0 }
 0x10f   : > { %v638_v4 = vpop.f32.mrf.mxu1 }
 0x110   : > { %v678_v5 = vadd.f32 %v657_v1, %v340_v63  ;;  %v639_v6 = vadd.f32 %v638_v4, %v589_v2 }
 0x112   : > { %694 = vst [vmem:[#allocation2 + $0x60] sm:$0xff] %v678_v5  ;;  %v671_v7 = vadd.f32 %v639_v6, %v333_v3 }
 0x114   : > { %687 = vst [vmem:[#allocation2 + $0x68] sm:$0xff] %v671_v7  ;;  %v609_v8 = vpop.f32.mrf.mxu2 }
 0x115   : > { %v658_v10 = vpop.f32.mrf.mxu3 }
 0x116   : > { %v659_v11 = vadd.f32 %v658_v10, %v609_v8  ;;  %v592_v12 = vpop.f32.mrf.mxu0 }
 0x117   : > { %v641_v14 = vpop.f32.mrf.mxu1 }
 0x118   : > { %v679_v15 = vadd.f32 %v659_v11, %v341_v9  ;;  %v642_v16 = vadd.f32 %v641_v14, %v592_v12 }
 0x11a   : > { %695 = vst [vmem:[#allocation2 + $0x70] sm:$0xff] %v679_v15  ;;  %v672_v17 = vadd.f32 %v642_v16, %v334_v13 }
 0x11c   : > { %688 = vst [vmem:[#allocation2 + $0x8] sm:$0xff] %v672_v17  ;;  %v612_v18 = vpop.f32.mrf.mxu2 }
 0x11d   : > { %v661_v20 = vpop.f32.mrf.mxu3 }
 0x11e   : > { %v662_v21 = vadd.f32 %v661_v20, %v612_v18  ;;  %v594_v22 = vpop.f32.mrf.mxu0 }
 0x11f   : > { %v643_v24 = vpop.f32.mrf.mxu1 }
 0x120   : > { %v680_v25 = vadd.f32 %v662_v21, %v342_v19  ;;  %v644_v26 = vadd.f32 %v643_v24, %v594_v22 }
 0x122   : > { %696 = vst [vmem:[#allocation2 + $0x78] sm:$0xff] %v680_v25  ;;  %v673_v27 = vadd.f32 %v644_v26, %v335_v23 }
 0x124   : > { %689 = vst [vmem:[#allocation2 + $0x48] sm:$0xff] %v673_v27  ;;  %v614_v28 = vpop.f32.mrf.mxu2 }
 0x125   : > { %v663_v30 = vpop.f32.mrf.mxu3 }
 0x126   : > { %v664_v31 = vadd.f32 %v663_v30, %v614_v28  ;;  %701 = sbr.rel (%p999_p13) target bundleno = 310 (0x136), region = 74 }
 0x128   : > { %v681_v32 = vadd.f32 %v664_v31, %v343_v29 }
 0x12a   : > { %697 = vst [vmem:[#allocation2 + $0x28] sm:$0xff] %v681_v32 }
 0x12b   : > { %v702_v33 = vld [vmem:[#allocation2 + $0x30] sm:$0xff]  ;;  %v703_v34 = vld [vmem:[#allocation2] sm:$0xff]  ;;  %v704_v35 = vld [vmem:[#allocation2 + $0x58] sm:$0xff] }
 0x12c   : > { %v1038_v36 = vpack.c.bf16 %v703_v34, %v702_v33  ;;  %v705_v37 = vld [vmem:[#allocation2 + $0x18] sm:$0xff]  ;;  %v706_v38 = vld [vmem:[#allocation2 + $0x50] sm:$0xff]  ;;  %v707_v39 = vld [vmem:[#allocation2 + $0x68] sm:$0xff] }
 0x12d   : > { %v1043_v40 = vpack.c.bf16 %v705_v37, %v704_v35  ;;  %v1048_v41 = vpack.c.bf16 %v707_v39, %v706_v38  ;;  %v708_v42 = vld [vmem:[#allocation2 + $0x8] sm:$0xff]  ;;  %v710_v44 = vld [vmem:[#allocation2 + $0x40] sm:$0xff]  ;;  %v712_v47 = vld [vmem:[#allocation2 + $0x10] sm:$0xff] }
 0x12e   : > { %v709_v43 = vld [vmem:[#allocation2 + $0x48] sm:$0xff]  ;;  %1039 = vst [vmem:[%s1318_s26] sm:$0xff] %v1038_v36   ;;  %v711_v46 = vld [vmem:[#allocation2 + $0x20] sm:$0xff]  ;;  %v713_v48 = vld [vmem:[#allocation2 + $0x38] sm:$0xff] }
 0x12f   : > { %v1053_v45 = vpack.c.bf16 %v709_v43, %v708_v42  ;;  %1075 = vst [vmem:[%s1318_s26 + $0x8] sm:$0xff] %v1043_v40   ;;  %v1058_v49 = vpack.c.bf16 %v711_v46, %v710_v44  ;;  %v1063_v50 = vpack.c.bf16 %v713_v48, %v712_v47  ;;  %v714_v51 = vld [vmem:[#allocation2 + $0x60] sm:$0xff]  ;;  %v715_v52 = vld [vmem:[#allocation2 + $0x70] sm:$0xff]  ;;  %v716_v53 = vld [vmem:[#allocation2 + $0x78] sm:$0xff] }
 0x130   : > { %1076 = vst [vmem:[%s1318_s26 + $0x10] sm:$0xff] %v1048_v41   ;;  %v1068_v54 = vpack.c.bf16 %v715_v52, %v714_v51 }
 0x131   : > { %v717_v55 = vld [vmem:[#allocation2 + $0x28] sm:$0xff]  ;;  %1077 = vst [vmem:[%s1318_s26 + $0x18] sm:$0xff] %v1053_v45  }
 0x132   : > { %v1073_v56 = vpack.c.bf16 %v717_v55, %v716_v53  ;;  %1078 = vst [vmem:[%s1318_s26 + $0x20] sm:$0xff] %v1058_v49  }
 0x133   : > { %1079 = vst [vmem:[%s1318_s26 + $0x28] sm:$0xff] %v1063_v50  }
 0x134   : > { %1080 = vst [vmem:[%s1318_s26 + $0x30] sm:$0xff] %v1068_v54  }
 0x135   : > { %1081 = vst [vmem:[%s1318_s26 + $0x38] sm:$0xff] %v1073_v56  }
 0x136 PF: > { %s12_s15 = sadd.s32 1, %s1209_s15   ;;  %s1404_s9 = smov %s1189_s10 }
 0x137   : > { %p9_p0 = scmp.ge.s32.totalorder %s12_s15, 6   ;;  %s1405_s10 = smov %s1278_s22 }
 0x138   : > { %s1406_s11 = smov %s1201_s13  ;;  %s1407_s12 = smov %s1205_s14 }
 0x139   : > { %s1408_s13 = smov %s1411_s16  ;;  %s1409_s14 = smov %s1415_s17 }
 0x13a   :  { %11 = sbr.rel (!%p9_p0) target bundleno = 4 (0x4), region = 112 }

// kernel: graphsage_classifier_forward.4
= control target key start
LH: loop header
LB: loop body
LE: loop exit
PB: predicated region body
PF: predicated region fallthrough
CT: control target
= control target key end

     0   :  { %s1123_s9 = smov 0   ;;  %s1125_s10 = smov 0   ;;  %s1308_s0 = inlined_call_operand.vmem [shape: bf16[128,512], index: 0, kind: input, shape index: {}]   ;;  %s1309_s1 = inlined_call_operand.vmem [shape: bf16[512,128], index: 1, kind: input, shape index: {}]   ;;  %s1310_s2 = inlined_call_operand.vmem [shape: f32[128,128], index: 2, kind: output, shape index: {}]  }
   0x1   :  { %s1127_s11 = smov 0   ;;  %s1129_s12 = smov 0  }
   0x2   :  { %s1131_s13 = smov 0  }
   0x3 LB: > { %s24_s14 = sadd.s32 1, %s1101_s12  ;;  %p47_p1 = scmp.ne.s32.totalorder %s1093_s10, %s1089_s9  ;;  %s1105_s13 = sphi %s1131_s13, %s12_s13   ;;  %s1101_s12 = sphi %s1129_s12, %s1314_s12   ;;  %s1097_s11 = sphi %s1127_s11, %s1313_s11   ;;  %s1093_s10 = sphi %s1125_s10, %s1312_s10   ;;  %s1089_s9 = sphi %s1123_s9, %s1311_s9  }
   0x4   : > { %p25_p0 = scmp.ge.s32.totalorder %s24_s14, 2  ;;  %p48_p2 = scmp.eq.s32.totalorder %s1105_s13, 0 }
   0x5   : > { %s40_s16 = sadd.s32 1, %s1093_s10  ;;  %p835_p5 = scmp.ge.s32.totalorder %s1105_s13, 2 }
   0x6   : > { %s1316_s14 = smov (%p25_p0, %s24_s14), 0  ;;  %p49_p3 = por %p48_p2, %p47_p1 }
   0x7   : > { %s36_s15 = ssub.s32 %s1101_s12, %s1316_s14  ;;  %129 = sbr.rel (%p835_p5) target bundleno = 32 (0x20), region = 16 }
   0x8   : > { %p38_p4 = scmp.eq.s32.totalorder %s36_s15, 0 }
   0xa   : > { %s1158_s17 = scalar_select %p38_p4, %s1093_s10, %s40_s16  }
   0xc   : > { %132 = sbr.rel (!%p49_p3) target bundleno = 32 (0x20), region = 20  ;;  %s134_s18 = sand.u32 (%p49_p3), 1, %s1093_s10  }
   0xd   : > { %s977_s19 = sshll.u32 (%p49_p3), %s1101_s12, 3  ;;  %s836_s20 = sshll.u32 (%p49_p3), %s134_s18, 7 }
   0xe   : > { %s1166_s23 = scalar_lea.vmem (%p49_p3), %s1308_s0, %s977_s19  ;;  %s136_s24 = scalar_lea.vmem (%p49_p3), [#allocation3], %s836_s20 }
   0xf   : > { %v201_v0 = vld [vmem:[%s1166_s23] sm:$0xff] (%p49_p3)  ;;  %v203_v1 = vld [vmem:[%s1166_s23 + $0x10] sm:$0xff] (%p49_p3) }
  0x10   : > { %v205_v2 = vld [vmem:[%s1166_s23 + $0x20] sm:$0xff] (%p49_p3)  ;;  %202 = vst [vmem:[%s136_s24] sm:$0xff] (%p49_p3), %v201_v0  ;;  %v207_v3 = vld [vmem:[%s1166_s23 + $0x30] sm:$0xff] (%p49_p3) }
  0x11   : > { %204 = vst [vmem:[%s136_s24 + $0x8] sm:$0xff] %v203_v1  ;;  %v209_v4 = vld [vmem:[%s1166_s23 + $0x40] sm:$0xff]  ;;  %v211_v5 = vld [vmem:[%s1166_s23 + $0x50] sm:$0xff] }
  0x12   : > { %206 = vst [vmem:[%s136_s24 + $0x10] sm:$0xff] %v205_v2  ;;  %v213_v6 = vld [vmem:[%s1166_s23 + $0x60] sm:$0xff]  ;;  %v215_v7 = vld [vmem:[%s1166_s23 + $0x70] sm:$0xff] }
  0x13   : > { %208 = vst [vmem:[%s136_s24 + $0x18] sm:$0xff] %v207_v3  ;;  %v217_v8 = vld [vmem:[%s1166_s23 + $0x80] sm:$0xff]  ;;  %v219_v9 = vld [vmem:[%s1166_s23 + $0x90] sm:$0xff] }
  0x14   : > { %210 = vst [vmem:[%s136_s24 + $0x20] sm:$0xff] %v209_v4  ;;  %v221_v10 = vld [vmem:[%s1166_s23 + $0xa0] sm:$0xff]  ;;  %v223_v11 = vld [vmem:[%s1166_s23 + $0xb0] sm:$0xff] }
  0x15   : > { %212 = vst [vmem:[%s136_s24 + $0x28] sm:$0xff] %v211_v5  ;;  %v225_v12 = vld [vmem:[%s1166_s23 + $0xc0] sm:$0xff]  ;;  %v227_v13 = vld [vmem:[%s1166_s23 + $0xd0] sm:$0xff] }
  0x16   : > { %214 = vst [vmem:[%s136_s24 + $0x30] sm:$0xff] %v213_v6  ;;  %v229_v14 = vld [vmem:[%s1166_s23 + $0xe0] sm:$0xff]  ;;  %v231_v15 = vld [vmem:[%s1166_s23 + $0xf0] sm:$0xff] }
  0x17   : > { %216 = vst [vmem:[%s136_s24 + $0x38] sm:$0xff] %v215_v7 }
  0x18   : > { %218 = vst [vmem:[%s136_s24 + $0x40] sm:$0xff] %v217_v8 }
  0x19   : > { %220 = vst [vmem:[%s136_s24 + $0x48] sm:$0xff] %v219_v9 }
  0x1a   : > { %222 = vst [vmem:[%s136_s24 + $0x50] sm:$0xff] %v221_v10 }
  0x1b   : > { %224 = vst [vmem:[%s136_s24 + $0x58] sm:$0xff] %v223_v11 }
  0x1c   : > { %226 = vst [vmem:[%s136_s24 + $0x60] sm:$0xff] %v225_v12 }
  0x1d   : > { %228 = vst [vmem:[%s136_s24 + $0x68] sm:$0xff] %v227_v13 }
  0x1e   : > { %230 = vst [vmem:[%s136_s24 + $0x70] sm:$0xff] %v229_v14 }
  0x1f   : > { %232 = vst [vmem:[%s136_s24 + $0x78] sm:$0xff] %v231_v15 }
  0x20 PF: > { %p839_p6 = scmp.ge.s32.totalorder %s1105_s13, 1  ;;  %p249_p7 = scmp.lt.s32.totalorder %s1105_s13, 3 }
  0x22   : > { %p250_p8 = pnand %p839_p6, %p249_p7 }
  0x23   : > { %s256_s25 = sand.u32 (!%p250_p8), 1, %s1089_s9   ;;  %s841_s26 = sshll.u32 (!%p250_p8), %s1097_s11, 5 }
  0x24   : > { %253 = sbr.rel (%p250_p8) target bundleno = 306 (0x132), region = 62  ;;  %s840_s27 = sshll.u32 (!%p250_p8), %s256_s25, 7 }
  0x25   : > { %p291_p9 = scmp.lt.s32.totalorder (!%p250_p8), %s841_s26, 63  ;;  %s1193_s4 = scalar_lea.vmem (!%p250_p8), [#allocation3], %s840_s27 }
  0x26   : > { %p843_p10 = scmp.ne.s32.totalorder (!%p250_p8), %s1097_s11, 0 }
  0x29   : > { %s1318_s26 = smov (!%p291_p9, %s841_s26), 63  ;;  %311 = sbr.rel (%p843_p10) target bundleno = 63 (0x3f), region = 70 }
  0x2a   : > { %s842_s28 = sshll.u32 %s1318_s26, 2 }
  0x2b   : > { %s1191_s3 = scalar_lea.vmem %s1309_s1, %s842_s28 }
  0x2e   : > { %v1107_v16 = vmov 0.0  }
  0x2f   : > { %312 = vst [vmem:[#allocation2 + $0x30] sm:$0xff] %v1107_v16 }
  0x30   : > { %313 = vst [vmem:[#allocation2] sm:$0xff] %v1107_v16 }
  0x31   : > { %314 = vst [vmem:[#allocation2 + $0x58] sm:$0xff] %v1107_v16 }
  0x32   : > { %315 = vst [vmem:[#allocation2 + $0x18] sm:$0xff] %v1107_v16 }
  0x33   : > { %316 = vst [vmem:[#allocation2 + $0x50] sm:$0xff] %v1107_v16 }
  0x34   : > { %317 = vst [vmem:[#allocation2 + $0x68] sm:$0xff] %v1107_v16 }
  0x35   : > { %318 = vst [vmem:[#allocation2 + $0x8] sm:$0xff] %v1107_v16 }
  0x36   : > { %319 = vst [vmem:[#allocation2 + $0x48] sm:$0xff] %v1107_v16 }
  0x37   : > { %320 = vst [vmem:[#allocation2 + $0x40] sm:$0xff] %v1107_v16 }
  0x38   : > { %321 = vst [vmem:[#allocation2 + $0x20] sm:$0xff] %v1107_v16 }
  0x39   : > { %322 = vst [vmem:[#allocation2 + $0x10] sm:$0xff] %v1107_v16 }
  0x3a   : > { %323 = vst [vmem:[#allocation2 + $0x38] sm:$0xff] %v1107_v16 }
  0x3b   : > { %324 = vst [vmem:[#allocation2 + $0x60] sm:$0xff] %v1107_v16 }
  0x3c   : > { %325 = vst [vmem:[#allocation2 + $0x70] sm:$0xff] %v1107_v16 }
  0x3d   : > { %326 = vst [vmem:[#allocation2 + $0x78] sm:$0xff] %v1107_v16 }
  0x3e   : > { %327 = vst [vmem:[#allocation2 + $0x28] sm:$0xff] %v1107_v16 }
  0x3f PF: > { %v1001_v17 = vld [vmem:[%s1191_s3 + $0x38] sm:$0xff]  ;;  %v1000_v19 = vld [vmem:[%s1191_s3 + $0x30] sm:$0xff]  ;;  %v999_v21 = vld [vmem:[%s1191_s3 + $0x28] sm:$0xff]  ;;  %p972_p11 = scmp.ne.s32.totalorder %s1097_s11, 1 }
  0x40   : > { %v1009_v18 = vld [vmem:[%s1191_s3 + $0x78] sm:$0xff]  ;;  %568 = vmatpush.bf16.msra.mxu0 %v1001_v17  ;;  %1010 = vmatpush.bf16.msra.mxu2 %v1001_v17  ;;  %v1008_v20 = vld [vmem:[%s1191_s3 + $0x70] sm:$0xff]  ;;  %v1007_v22 = vld [vmem:[%s1191_s3 + $0x68] sm:$0xff] }
  0x41   : > { %617 = vmatpush.bf16.msra.mxu1 %v1009_v18  ;;  %1018 = vmatpush.bf16.msra.mxu3 %v1009_v18  ;;  %v998_v23 = vld [vmem:[%s1191_s3 + $0x20] sm:$0xff]  ;;  %v997_v25 = vld [vmem:[%s1191_s3 + $0x18] sm:$0xff]  ;;  %v996_v27 = vld [vmem:[%s1191_s3 + $0x10] sm:$0xff] }
  0x42   : > { %v1006_v24 = vld [vmem:[%s1191_s3 + $0x60] sm:$0xff]  ;;  %v1005_v26 = vld [vmem:[%s1191_s3 + $0x58] sm:$0xff]  ;;  %v1004_v28 = vld [vmem:[%s1191_s3 + $0x50] sm:$0xff] }
  0x43   : > { %v995_v29 = vld [vmem:[%s1191_s3 + $0x8] sm:$0xff]  ;;  %v994_v31 = vld [vmem:[%s1191_s3] sm:$0xff]  ;;  %v854_v45 = vld [vmem:[%s1193_s4 + $0x10] sm:$0xf] }
  0x44   : > { %569 = vmatpush.bf16.msra.mxu0 %v1000_v19  ;;  %1011 = vmatpush.bf16.msra.mxu2 %v1000_v19  ;;  %v1003_v30 = vld [vmem:[%s1191_s3 + $0x48] sm:$0xff]  ;;  %v1002_v32 = vld [vmem:[%s1191_s3 + $0x40] sm:$0xff]  ;;  %v981_v46 = vld [vmem:[%s1193_s4 + $0x14] sm:$0xf0] }
  0x45   : > { %618 = vmatpush.bf16.msra.mxu1 %v1008_v20  ;;  %1019 = vmatpush.bf16.msra.mxu3 %v1008_v20  ;;  %v846_v33 = vld [vmem:[%s1193_s4] sm:$0xf]  ;;  %v979_v34 = vld [vmem:[%s1193_s4 + $0x4] sm:$0xf0]  ;;  %v978_v37 = vld [vmem:[%s1193_s4 + $0x4] sm:$0xf]  ;;  %v855_v53 = vor.u32 %v981_v46, %v854_v45 }
  0x46   : > { %v878_v35 = vld [vmem:[%s1193_s4 + $0x40] sm:$0xf]  ;;  %v987_v36 = vld [vmem:[%s1193_s4 + $0x44] sm:$0xf0]  ;;  %v848_v38 = vld [vmem:[%s1193_s4 + $0x8] sm:$0xf0]  ;;  %v847_v41 = vor.u32 %v979_v34, %v846_v33 }
  0x47   : > { %v986_v39 = vld [vmem:[%s1193_s4 + $0x44] sm:$0xf]  ;;  %v880_v40 = vld [vmem:[%s1193_s4 + $0x48] sm:$0xf0]  ;;  %v879_v42 = vor.u32 %v987_v36, %v878_v35  ;;  %v851_v43 = vor.u32 %v978_v37, %v848_v38  ;;  %v886_v47 = vld [vmem:[%s1193_s4 + $0x50] sm:$0xf] }
  0x48   : > { %570 = vmatpush.bf16.msra.mxu0 %v999_v21  ;;  %1012 = vmatpush.bf16.msra.mxu2 %v999_v21  ;;  %v883_v44 = vor.u32 %v986_v39, %v880_v40  ;;  %v989_v48 = vld [vmem:[%s1193_s4 + $0x54] sm:$0xf0]  ;;  %v980_v49 = vld [vmem:[%s1193_s4 + $0x14] sm:$0xf]  ;;  %v856_v50 = vld [vmem:[%s1193_s4 + $0x18] sm:$0xf0] }
  0x49   : > { %619 = vmatpush.bf16.msra.mxu1 %v1007_v22  ;;  %1020 = vmatpush.bf16.msra.mxu3 %v1007_v22  ;;  %v988_v51 = vld [vmem:[%s1193_s4 + $0x54] sm:$0xf]  ;;  %v888_v52 = vld [vmem:[%s1193_s4 + $0x58] sm:$0xf0]  ;;  %v887_v54 = vor.u32 %v989_v48, %v886_v47  ;;  %v859_v55 = vor.u32 %v980_v49, %v856_v50  ;;  %v862_v57 = vld [vmem:[%s1193_s4 + $0x20] sm:$0xf] }
  0x4a   : > { %v891_v56 = vor.u32 %v988_v51, %v888_v52  ;;  %v983_v58 = vld [vmem:[%s1193_s4 + $0x24] sm:$0xf0]  ;;  %v894_v59 = vld [vmem:[%s1193_s4 + $0x60] sm:$0xf]  ;;  %v982_v61 = vld [vmem:[%s1193_s4 + $0x24] sm:$0xf] }
  0x4b   : > { %v991_v60 = vld [vmem:[%s1193_s4 + $0x64] sm:$0xf0]  ;;  %v864_v62 = vld [vmem:[%s1193_s4 + $0x28] sm:$0xf0]  ;;  %v990_v63 = vld [vmem:[%s1193_s4 + $0x64] sm:$0xf]  ;;  %v863_v1 = vor.u32 %v983_v58, %v862_v57 }
  0x4c   : > { %571 = vmatpush.bf16.msra.mxu0 %v998_v23  ;;  %1013 = vmatpush.bf16.msra.mxu2 %v998_v23  ;;  %v896_v0 = vld [vmem:[%s1193_s4 + $0x68] sm:$0xf0]  ;;  %v895_v2 = vor.u32 %v991_v60, %v894_v59  ;;  %v867_v3 = vor.u32 %v982_v61, %v864_v62  ;;  %v870_v5 = vld [vmem:[%s1193_s4 + $0x30] sm:$0xf]  ;;  %v985_v6 = vld [vmem:[%s1193_s4 + $0x34] sm:$0xf0] }
  0x4d   : > { %620 = vmatpush.bf16.msra.mxu1 %v1006_v24  ;;  %1021 = vmatpush.bf16.msra.mxu3 %v1006_v24  ;;  %v899_v4 = vor.u32 %v990_v63, %v896_v0  ;;  %v902_v7 = vld [vmem:[%s1193_s4 + $0x70] sm:$0xf]  ;;  %v993_v8 = vld [vmem:[%s1193_s4 + $0x74] sm:$0xf0]  ;;  %v984_v9 = vld [vmem:[%s1193_s4 + $0x34] sm:$0xf]  ;;  %v871_v13 = vor.u32 %v985_v6, %v870_v5 }
  0x4e   : > { %v872_v10 = vld [vmem:[%s1193_s4 + $0x38] sm:$0xf0]  ;;  %v992_v11 = vld [vmem:[%s1193_s4 + $0x74] sm:$0xf]  ;;  %v903_v14 = vor.u32 %v993_v8, %v902_v7  ;;  %v336_v23 = vld [vmem:[#allocation2 + $0x40] sm:$0xff] }
  0x4f   : > { %v904_v12 = vld [vmem:[%s1193_s4 + $0x78] sm:$0xf0]  ;;  %v875_v15 = vor.u32 %v984_v9, %v872_v10  ;;  %v328_v18 = vld [vmem:[#allocation2 + $0x30] sm:$0xff]  ;;  %v337_v33 = vld [vmem:[#allocation2 + $0x20] sm:$0xff] }
  0x50   : > { %572 = vmatpush.bf16.msra.mxu0 %v997_v25  ;;  %1014 = vmatpush.bf16.msra.mxu2 %v997_v25  ;;  %v907_v16 = vor.u32 %v992_v11, %v904_v12  ;;  %v330_v37 = vld [vmem:[#allocation2 + $0x58] sm:$0xff]  ;;  %v332_v57 = vld [vmem:[#allocation2 + $0x50] sm:$0xff]  ;;  %v340_v63 = vld [vmem:[#allocation2 + $0x60] sm:$0xff] }
  0x51   : > { %621 = vmatpush.bf16.msra.mxu1 %v1005_v26  ;;  %1022 = vmatpush.bf16.msra.mxu3 %v1005_v26  ;;  %v331_v47 = vld [vmem:[#allocation2 + $0x18] sm:$0xff]  ;;  %v341_v9 = vld [vmem:[#allocation2 + $0x70] sm:$0xff] }
  0x54   : > { %573 = vmatpush.bf16.msra.mxu0 %v996_v27  ;;  %1015 = vmatpush.bf16.msra.mxu2 %v996_v27  ;;  %v329_v27 = vld [vmem:[#allocation2] sm:$0xff] }
  0x55   : > { %622 = vmatpush.bf16.msra.mxu1 %v1004_v28  ;;  %1023 = vmatpush.bf16.msra.mxu3 %v1004_v28 }
  0x58   : > { %574 = vmatpush.bf16.msra.mxu0 %v995_v29  ;;  %1016 = vmatpush.bf16.msra.mxu2 %v995_v29 }
  0x59   : > { %623 = vmatpush.bf16.msra.mxu1 %v1003_v30  ;;  %1024 = vmatpush.bf16.msra.mxu3 %v1003_v30 }
  0x5c   : > { %575 = vmatpush.bf16.msra.mxu0 %v994_v31  ;;  %1017 = vmatpush.bf16.msra.mxu2 %v994_v31 }
  0x5d   : > { %624 = vmatpush.bf16.msra.mxu1 %v1002_v32  ;;  %1025 = vmatpush.bf16.msra.mxu3 %v1002_v32 }
  0x5f   : > { %576 = vmatmul.bf16.vlgmr.msra.gmra.mxu0 %v847_v41  ;;  %596 = vmatmul.bf16.vlgmr.msra.gmra.mxu2 %v879_v42 }
  0x60   : > { %625 = vmatmul.bf16.vlgmr.msra.gmra.mxu1 %v851_v43  ;;  %645 = vmatmul.bf16.vlgmr.msra.gmra.mxu3 %v883_v44  ;;  %v338_v43 = vld [vmem:[#allocation2 + $0x10] sm:$0xff] }
  0x6f   : > { %581 = vmatmul.bf16.gmra.mxu0 %v855_v53  ;;  %601 = vmatmul.bf16.gmra.mxu2 %v887_v54  ;;  %v339_v53 = vld [vmem:[#allocation2 + $0x38] sm:$0xff] }
  0x70   : > { %630 = vmatmul.bf16.gmra.mxu1 %v859_v55  ;;  %650 = vmatmul.bf16.gmra.mxu3 %v891_v56 }
  0x7f   : > { %586 = vmatmul.bf16.gmra.mxu0 %v863_v1  ;;  %606 = vmatmul.bf16.gmra.mxu2 %v895_v2 }
  0x80   : > { %635 = vmatmul.bf16.gmra.mxu1 %v867_v3  ;;  %655 = vmatmul.bf16.gmra.mxu3 %v899_v4  ;;  %v333_v3 = vld [vmem:[#allocation2 + $0x68] sm:$0xff] }
  0x8f   : > { %591 = vmatmul.bf16.gmra.mxu0 %v871_v13  ;;  %611 = vmatmul.bf16.gmra.mxu2 %v903_v14  ;;  %v334_v13 = vld [vmem:[#allocation2 + $0x8] sm:$0xff] }
  0x90   : > { %640 = vmatmul.bf16.gmra.mxu1 %v875_v15  ;;  %660 = vmatmul.bf16.gmra.mxu3 %v907_v16 }
  0xdc   : > { %v577_v17 = vpop.f32.mrf.mxu0 }
  0xdd   : > { %v626_v19 = vpop.f32.mrf.mxu1 }
  0xde   : > { %v627_v20 = vadd.f32 %v626_v19, %v577_v17  ;;  %v342_v19 = vld [vmem:[#allocation2 + $0x78] sm:$0xff] }
  0xe0   : > { %v666_v21 = vadd.f32 %v627_v20, %v328_v18 }
  0xe2   : > { %682 = vst [vmem:[#allocation2 + $0x30] sm:$0xff] %v666_v21  ;;  %v597_v22 = vpop.f32.mrf.mxu2 }
  0xe3   : > { %v646_v24 = vpop.f32.mrf.mxu3 }
  0xe4   : > { %v647_v25 = vadd.f32 %v646_v24, %v597_v22  ;;  %v579_v26 = vpop.f32.mrf.mxu0 }
  0xe5   : > { %v628_v28 = vpop.f32.mrf.mxu1 }
  0xe6   : > { %v674_v29 = vadd.f32 %v647_v25, %v336_v23  ;;  %v629_v30 = vadd.f32 %v628_v28, %v579_v26  ;;  %v335_v23 = vld [vmem:[#allocation2 + $0x48] sm:$0xff] }
  0xe8   : > { %690 = vst [vmem:[#allocation2 + $0x40] sm:$0xff] %v674_v29  ;;  %v667_v31 = vadd.f32 %v629_v30, %v329_v27  ;;  %v343_v29 = vld [vmem:[#allocation2 + $0x28] sm:$0xff] }
  0xea   : > { %683 = vst [vmem:[#allocation2] sm:$0xff] %v667_v31  ;;  %v599_v32 = vpop.f32.mrf.mxu2 }
  0xeb   : > { %v648_v34 = vpop.f32.mrf.mxu3 }
  0xec   : > { %v649_v35 = vadd.f32 %v648_v34, %v599_v32  ;;  %v582_v36 = vpop.f32.mrf.mxu0 }
  0xed   : > { %v631_v38 = vpop.f32.mrf.mxu1 }
  0xee   : > { %v675_v39 = vadd.f32 %v649_v35, %v337_v33  ;;  %v632_v40 = vadd.f32 %v631_v38, %v582_v36 }
  0xf0   : > { %691 = vst [vmem:[#allocation2 + $0x20] sm:$0xff] %v675_v39  ;;  %v668_v41 = vadd.f32 %v632_v40, %v330_v37 }
  0xf2   : > { %684 = vst [vmem:[#allocation2 + $0x58] sm:$0xff] %v668_v41  ;;  %v602_v42 = vpop.f32.mrf.mxu2 }
  0xf3   : > { %v651_v44 = vpop.f32.mrf.mxu3 }
  0xf4   : > { %v652_v45 = vadd.f32 %v651_v44, %v602_v42  ;;  %v584_v46 = vpop.f32.mrf.mxu0 }
  0xf5   : > { %v633_v48 = vpop.f32.mrf.mxu1 }
  0xf6   : > { %v676_v49 = vadd.f32 %v652_v45, %v338_v43  ;;  %v634_v50 = vadd.f32 %v633_v48, %v584_v46 }
  0xf8   : > { %692 = vst [vmem:[#allocation2 + $0x10] sm:$0xff] %v676_v49  ;;  %v669_v51 = vadd.f32 %v634_v50, %v331_v47 }
  0xfa   : > { %685 = vst [vmem:[#allocation2 + $0x18] sm:$0xff] %v669_v51  ;;  %v604_v52 = vpop.f32.mrf.mxu2 }
  0xfb   : > { %v653_v54 = vpop.f32.mrf.mxu3 }
  0xfc   : > { %v654_v55 = vadd.f32 %v653_v54, %v604_v52  ;;  %v587_v56 = vpop.f32.mrf.mxu0 }
  0xfd   : > { %v636_v58 = vpop.f32.mrf.mxu1 }
  0xfe   : > { %v677_v59 = vadd.f32 %v654_v55, %v339_v53  ;;  %v637_v60 = vadd.f32 %v636_v58, %v587_v56 }
 0x100   : > { %693 = vst [vmem:[#allocation2 + $0x38] sm:$0xff] %v677_v59  ;;  %v670_v61 = vadd.f32 %v637_v60, %v332_v57 }
 0x102   : > { %686 = vst [vmem:[#allocation2 + $0x50] sm:$0xff] %v670_v61  ;;  %v607_v62 = vpop.f32.mrf.mxu2 }
 0x103   : > { %v656_v0 = vpop.f32.mrf.mxu3 }
 0x104   : > { %v657_v1 = vadd.f32 %v656_v0, %v607_v62  ;;  %v589_v2 = vpop.f32.mrf.mxu0 }
 0x105   : > { %v638_v4 = vpop.f32.mrf.mxu1 }
 0x106   : > { %v678_v5 = vadd.f32 %v657_v1, %v340_v63  ;;  %v639_v6 = vadd.f32 %v638_v4, %v589_v2 }
 0x108   : > { %694 = vst [vmem:[#allocation2 + $0x60] sm:$0xff] %v678_v5  ;;  %v671_v7 = vadd.f32 %v639_v6, %v333_v3 }
 0x10a   : > { %687 = vst [vmem:[#allocation2 + $0x68] sm:$0xff] %v671_v7  ;;  %v609_v8 = vpop.f32.mrf.mxu2 }
 0x10b   : > { %v658_v10 = vpop.f32.mrf.mxu3 }
 0x10c   : > { %v659_v11 = vadd.f32 %v658_v10, %v609_v8  ;;  %v592_v12 = vpop.f32.mrf.mxu0 }
 0x10d   : > { %v641_v14 = vpop.f32.mrf.mxu1 }
 0x10e   : > { %v679_v15 = vadd.f32 %v659_v11, %v341_v9  ;;  %v642_v16 = vadd.f32 %v641_v14, %v592_v12 }
 0x110   : > { %695 = vst [vmem:[#allocation2 + $0x70] sm:$0xff] %v679_v15  ;;  %v672_v17 = vadd.f32 %v642_v16, %v334_v13 }
 0x112   : > { %688 = vst [vmem:[#allocation2 + $0x8] sm:$0xff] %v672_v17  ;;  %v612_v18 = vpop.f32.mrf.mxu2 }
 0x113   : > { %v661_v20 = vpop.f32.mrf.mxu3 }
 0x114   : > { %v662_v21 = vadd.f32 %v661_v20, %v612_v18  ;;  %v594_v22 = vpop.f32.mrf.mxu0 }
 0x115   : > { %v643_v24 = vpop.f32.mrf.mxu1 }
 0x116   : > { %v680_v25 = vadd.f32 %v662_v21, %v342_v19  ;;  %v644_v26 = vadd.f32 %v643_v24, %v594_v22 }
 0x118   : > { %696 = vst [vmem:[#allocation2 + $0x78] sm:$0xff] %v680_v25  ;;  %v673_v27 = vadd.f32 %v644_v26, %v335_v23 }
 0x11a   : > { %689 = vst [vmem:[#allocation2 + $0x48] sm:$0xff] %v673_v27  ;;  %v614_v28 = vpop.f32.mrf.mxu2 }
 0x11b   : > { %v663_v30 = vpop.f32.mrf.mxu3 }
 0x11c   : > { %v664_v31 = vadd.f32 %v663_v30, %v614_v28  ;;  %701 = sbr.rel (%p972_p11) target bundleno = 306 (0x132), region = 74 }
 0x11e   : > { %v681_v32 = vadd.f32 %v664_v31, %v343_v29 }
 0x120   : > { %697 = vst [vmem:[#allocation2 + $0x28] sm:$0xff] %v681_v32 }
 0x121   : > { %v702_v33 = vld [vmem:[#allocation2 + $0x30] sm:$0xff]  ;;  %v703_v34 = vld [vmem:[#allocation2] sm:$0xff]  ;;  %v704_v35 = vld [vmem:[#allocation2 + $0x58] sm:$0xff] }
 0x122   : > { %718 = vst [vmem:[%s1310_s2] sm:$0xff] %v702_v33  ;;  %v705_v36 = vld [vmem:[#allocation2 + $0x18] sm:$0xff]  ;;  %v706_v37 = vld [vmem:[#allocation2 + $0x50] sm:$0xff]  ;;  %v707_v38 = vld [vmem:[#allocation2 + $0x68] sm:$0xff] }
 0x123   : > { %719 = vst [vmem:[%s1310_s2 + $0x8] sm:$0xff] %v703_v34  ;;  %v708_v39 = vld [vmem:[#allocation2 + $0x8] sm:$0xff]  ;;  %v710_v41 = vld [vmem:[#allocation2 + $0x40] sm:$0xff]  ;;  %v712_v43 = vld [vmem:[#allocation2 + $0x10] sm:$0xff] }
 0x124   : > { %720 = vst [vmem:[%s1310_s2 + $0x10] sm:$0xff] %v704_v35  ;;  %v709_v40 = vld [vmem:[#allocation2 + $0x48] sm:$0xff]  ;;  %v711_v42 = vld [vmem:[#allocation2 + $0x20] sm:$0xff]  ;;  %v713_v44 = vld [vmem:[#allocation2 + $0x38] sm:$0xff] }
 0x125   : > { %721 = vst [vmem:[%s1310_s2 + $0x18] sm:$0xff] %v705_v36  ;;  %v714_v45 = vld [vmem:[#allocation2 + $0x60] sm:$0xff]  ;;  %v715_v46 = vld [vmem:[#allocation2 + $0x70] sm:$0xff]  ;;  %v716_v47 = vld [vmem:[#allocation2 + $0x78] sm:$0xff] }
 0x126   : > { %722 = vst [vmem:[%s1310_s2 + $0x20] sm:$0xff] %v706_v37 }
 0x127   : > { %723 = vst [vmem:[%s1310_s2 + $0x28] sm:$0xff] %v707_v38  ;;  %v717_v48 = vld [vmem:[#allocation2 + $0x28] sm:$0xff] }
 0x128   : > { %724 = vst [vmem:[%s1310_s2 + $0x30] sm:$0xff] %v708_v39 }
 0x129   : > { %725 = vst [vmem:[%s1310_s2 + $0x38] sm:$0xff] %v709_v40 }
 0x12a   : > { %726 = vst [vmem:[%s1310_s2 + $0x40] sm:$0xff] %v710_v41 }
 0x12b   : > { %727 = vst [vmem:[%s1310_s2 + $0x48] sm:$0xff] %v711_v42 }
 0x12c   : > { %728 = vst [vmem:[%s1310_s2 + $0x50] sm:$0xff] %v712_v43 }
 0x12d   : > { %729 = vst [vmem:[%s1310_s2 + $0x58] sm:$0xff] %v713_v44 }
 0x12e   : > { %730 = vst [vmem:[%s1310_s2 + $0x60] sm:$0xff] %v714_v45 }
 0x12f   : > { %731 = vst [vmem:[%s1310_s2 + $0x68] sm:$0xff] %v715_v46 }
 0x130   : > { %732 = vst [vmem:[%s1310_s2 + $0x70] sm:$0xff] %v716_v47 }
 0x131   : > { %733 = vst [vmem:[%s1310_s2 + $0x78] sm:$0xff] %v717_v48 }
 0x132 PF: > { %s12_s13 = sadd.s32 1, %s1105_s13   ;;  %s1311_s9 = smov %s1093_s10 }
 0x133   : > { %p9_p12 = scmp.ge.s32.totalorder %s12_s13, 4   ;;  %s1312_s10 = smov %s1158_s17 }
 0x134   : > { %s1313_s11 = smov %s1101_s12  ;;  %s1314_s12 = smov %s1316_s14 }
 0x135   :  { %11 = sbr.rel (!%p9_p12) target bundleno = 3 (0x3), region = 112 }

// kernel: graphsage_classifier_forward.5
= control target key start
LH: loop header
LB: loop body
LE: loop exit
PB: predicated region body
PF: predicated region fallthrough
CT: control target
= control target key end

     0   :  { %s1079_s18 = smov 0   ;;  %s1081_s19 = smov 0   ;;  %s1239_s0 = inlined_call_operand.vmem [shape: bf16[128,256], index: 0, kind: input, shape index: {}]   ;;  %s1240_s1 = inlined_call_operand.vmem [shape: bf16[256,128], index: 1, kind: input, shape index: {}]   ;;  %s1241_s2 = inlined_call_operand.vmem [shape: f32[128,128], index: 2, kind: input, shape index: {}]   ;;  %s1242_s3 = inlined_call_operand.vmem [shape: bf16[128,128], index: 3, kind: input, shape index: {}]   ;;  %s1243_s4 = inlined_call_operand.vmem [shape: f32[1,128], index: 4, kind: input, shape index: {}]   ;;  %s1244_s5 = inlined_call_operand.vmem [shape: f32[128,128], index: 5, kind: output, shape index: {}]  }
   0x1   :  { %s1083_s20 = smov 0   ;;  %s1085_s21 = smov 0  }
   0x2   :  { %s1087_s22 = smov 0   ;;  %s1089_s23 = smov 0  }
   0x3   :  { %s1091_s24 = smov 0  }
   0x4 LB: > { %s24_s25 = sadd.s32 1, %s1038_s22  ;;  %s27_s26 = sadd.s32 1, %s1042_s23  ;;  %s1046_s24 = sphi %s1091_s24, %s15_s24   ;;  %s1042_s23 = sphi %s1089_s23, %s1250_s23   ;;  %s1038_s22 = sphi %s1087_s22, %s1249_s22   ;;  %s1034_s21 = sphi %s1085_s21, %s1248_s21   ;;  %s1030_s20 = sphi %s1083_s20, %s1247_s20   ;;  %s1026_s19 = sphi %s1081_s19, %s1246_s19   ;;  %s1022_s18 = sphi %s1079_s18, %s1245_s18  }
   0x5   : > { %p25_p0 = scmp.ge.s32.totalorder %s24_s25, 2  ;;  %p43_p1 = scmp.ne.s32.totalorder %s1026_s19, %s1022_s18 }
   0x6   : > { %p44_p2 = scmp.eq.s32.totalorder %s1046_s24, 0  ;;  %s36_s30 = sadd.s32 1, %s1026_s19 }
   0x7   : > { %s1252_s25 = smov (%p25_p0, %s24_s25), 0  ;;  %s1254_s26 = smov (!%p25_p0, %s27_s26), %s1042_s23 }
   0x8   : > { %p45_p3 = por %p44_p2, %p43_p1  ;;  %p29_p4 = scmp.ge.s32.totalorder %s1254_s26, 2 }
   0x9   : > { %s32_s27 = ssub.s32 %s1038_s22, %s1252_s25  ;;  %p768_p6 = scmp.ge.s32.totalorder %s1046_s24, 4 }
   0xa   : > { %s1256_s26 = smov (%p29_p4, %s1254_s26), 0 }
   0xb   : > { %s31_s28 = ssub.s32 %s1042_s23, %s1256_s26  ;;  %195 = sbr.rel (%p768_p6) target bundleno = 30 (0x1e), region = 24 }
   0xc   : > { %s33_s29 = sor.u32 %s32_s27, %s31_s28 }
   0xd   : > { %p34_p5 = scmp.eq.s32.totalorder %s33_s29, 0 }
   0xf   : > { %s1130_s6 = scalar_select %p34_p5, %s1026_s19, %s36_s30  }
  0x10   : > { %198 = sbr.rel (!%p45_p3) target bundleno = 30 (0x1e), region = 28  ;;  %s200_s7 = sand.u32 (%p45_p3), 1, %s1026_s19  }
  0x11   : > { %s865_s8 = sshll.u32 (%p45_p3), %s1042_s23, 4  ;;  %s769_s9 = sshll.u32 (%p45_p3), %s200_s7, 5 }
  0x12   : > { %s205_s10 = sadd.s32 (%p45_p3), %s1038_s22, %s865_s8  ;;  %s202_s15 = scalar_lea.vmem (%p45_p3), [#allocation3], %s769_s9 }
  0x13   : > { %s772_s11 = sshll.u32 (%p45_p3), %s205_s10, 2 }
  0x14   : > { %s207_s14 = scalar_lea.vmem (%p45_p3), %s1239_s0, %s772_s11 }
  0x15   : > { %v224_v0 = vld [vmem:[%s207_s14] sm:$0xf]  ;;  %v226_v1 = vld [vmem:[%s207_s14 + $0x8] sm:$0xf]  ;;  %v228_v2 = vld [vmem:[%s207_s14 + $0x10] sm:$0xf] }
  0x16   : > { %225 = vst [vmem:[%s202_s15] sm:$0xf] %v224_v0  ;;  %v230_v3 = vld [vmem:[%s207_s14 + $0x18] sm:$0xf]  ;;  %v232_v4 = vld [vmem:[%s207_s14 + $0x20] sm:$0xf] }
  0x17   : > { %227 = vst [vmem:[%s202_s15 + $0x4] sm:$0xf] %v226_v1  ;;  %v234_v5 = vld [vmem:[%s207_s14 + $0x28] sm:$0xf]  ;;  %v236_v6 = vld [vmem:[%s207_s14 + $0x30] sm:$0xf] }
  0x18   : > { %229 = vst [vmem:[%s202_s15 + $0x8] sm:$0xf] %v228_v2  ;;  %v238_v7 = vld [vmem:[%s207_s14 + $0x38] sm:$0xf] }
  0x19   : > { %231 = vst [vmem:[%s202_s15 + $0xc] sm:$0xf] %v230_v3 }
  0x1a   : > { %233 = vst [vmem:[%s202_s15 + $0x10] sm:$0xf] %v232_v4 }
  0x1b   : > { %235 = vst [vmem:[%s202_s15 + $0x14] sm:$0xf] %v234_v5 }
  0x1c   : > { %237 = vst [vmem:[%s202_s15 + $0x18] sm:$0xf] %v236_v6 }
  0x1d   : > { %239 = vst [vmem:[%s202_s15 + $0x1c] sm:$0xf] %v238_v7 }
  0x1e PF: > { %p773_p7 = scmp.ge.s32.totalorder %s1046_s24, 1  ;;  %p296_p8 = scmp.lt.s32.totalorder %s1046_s24, 5 }
  0x20   : > { %p297_p9 = pnand %p773_p7, %p296_p8 }
  0x21   : > { %s303_s16 = sand.u32 (!%p297_p9), 1, %s1022_s18   ;;  %s775_s17 = sshll.u32 (!%p297_p9), %s1030_s20, 4 }
  0x22   : > { %300 = sbr.rel (%p297_p9) target bundleno = 410 (0x19a), region = 77  ;;  %s774_s27 = sshll.u32 (!%p297_p9), %s303_s16, 5 }
  0x23   : > { %p342_p10 = scmp.lt.s32.totalorder (!%p297_p9), %s775_s17, 31  ;;  %s777_s28 = sshll.u32 (!%p297_p9), %s1034_s21, 3 }
  0x24   : > { %p348_p11 = scmp.lt.s32.totalorder (!%p297_p9), %s777_s28, 15  ;;  %s1159_s21 = scalar_lea.vmem (!%p297_p9), [#allocation3], %s774_s27 }
  0x25   : > { %p781_p12 = scmp.ne.s32.totalorder (!%p297_p9), %s1030_s20, 0 }
  0x27   : > { %s1258_s17 = smov (!%p342_p10, %s775_s17), 31  ;;  %s1260_s28 = smov (!%p348_p11, %s777_s28), 15 }
  0x28   : > { %s776_s29 = sshll.u32 %s1258_s17, 2  ;;  %s778_s9 = sshll.u32 %s1260_s28, 3 }
  0x29   : > { %s1147_s8 = scalar_lea.vmem %s1240_s1, %s776_s29  ;;  %s1152_s12 = scalar_lea.vmem %s1241_s2, %s778_s9 }
  0x2a   : > { %s1157_s14 = scalar_lea.vmem %s1244_s5, %s778_s9  ;;  %362 = sbr.rel (%p781_p12) target bundleno = 56 (0x38), region = 85 }
  0x2f   : > { %v1048_v8 = vmov 0.0  }
  0x30   : > { %363 = vst [vmem:[#allocation2 + $0x30] sm:$0xff] %v1048_v8 }
  0x31   : > { %364 = vst [vmem:[#allocation2] sm:$0xff] %v1048_v8 }
  0x32   : > { %365 = vst [vmem:[#allocation2 + $0x18] sm:$0xff] %v1048_v8 }
  0x33   : > { %366 = vst [vmem:[#allocation2 + $0x10] sm:$0xff] %v1048_v8 }
  0x34   : > { %367 = vst [vmem:[#allocation2 + $0x8] sm:$0xff] %v1048_v8 }
  0x35   : > { %368 = vst [vmem:[#allocation2 + $0x20] sm:$0xff] %v1048_v8 }
  0x36   : > { %369 = vst [vmem:[#allocation2 + $0x28] sm:$0xff] %v1048_v8 }
  0x37   : > { %370 = vst [vmem:[#allocation2 + $0x38] sm:$0xff] %v1048_v8 }
  0x38 PF: > { %v877_v9 = vld [vmem:[%s1147_s8 + $0x38] sm:$0xff]  ;;  %v876_v10 = vld [vmem:[%s1147_s8 + $0x30] sm:$0xff]  ;;  %v875_v11 = vld [vmem:[%s1147_s8 + $0x28] sm:$0xff]  ;;  %p830_p13 = scmp.ne.s32.totalorder %s1030_s20, 1 }
  0x39   : > { %475 = vmatpush.bf16.msra.mxu0 %v877_v9  ;;  %886 = vmatpush.bf16.msra.mxu1 %v877_v9  ;;  %v874_v12 = vld [vmem:[%s1147_s8 + $0x20] sm:$0xff]  ;;  %v873_v13 = vld [vmem:[%s1147_s8 + $0x18] sm:$0xff]  ;;  %v872_v14 = vld [vmem:[%s1147_s8 + $0x10] sm:$0xff] }
  0x3a   : > { %887 = vmatpush.bf16.msra.mxu2 %v877_v9  ;;  %888 = vmatpush.bf16.msra.mxu3 %v877_v9  ;;  %v871_v15 = vld [vmem:[%s1147_s8 + $0x8] sm:$0xff]  ;;  %v870_v16 = vld [vmem:[%s1147_s8] sm:$0xff]  ;;  %v868_v19 = vld [vmem:[%s1159_s21 + $0x10] sm:$0xff] }
  0x3b   : > { %v866_v17 = vld [vmem:[%s1159_s21] sm:$0xff]  ;;  %v867_v18 = vld [vmem:[%s1159_s21 + $0x8] sm:$0xff]  ;;  %v869_v20 = vld [vmem:[%s1159_s21 + $0x18] sm:$0xff] }
  0x3c   : > { %v371_v21 = vld [vmem:[#allocation2 + $0x30] sm:$0xff]  ;;  %v373_v22 = vld [vmem:[#allocation2 + $0x18] sm:$0xff]  ;;  %v375_v27 = vld [vmem:[#allocation2 + $0x8] sm:$0xff] }
  0x3d   : > { %476 = vmatpush.bf16.msra.mxu0 %v876_v10  ;;  %889 = vmatpush.bf16.msra.mxu1 %v876_v10  ;;  %v377_v28 = vld [vmem:[#allocation2 + $0x28] sm:$0xff]  ;;  %v372_v29 = vld [vmem:[#allocation2] sm:$0xff]  ;;  %v374_v30 = vld [vmem:[#allocation2 + $0x10] sm:$0xff] }
  0x3e   : > { %890 = vmatpush.bf16.msra.mxu2 %v876_v10  ;;  %891 = vmatpush.bf16.msra.mxu3 %v876_v10  ;;  %v376_v39 = vld [vmem:[#allocation2 + $0x20] sm:$0xff]  ;;  %v378_v40 = vld [vmem:[#allocation2 + $0x38] sm:$0xff] }
  0x41   : > { %477 = vmatpush.bf16.msra.mxu0 %v875_v11  ;;  %892 = vmatpush.bf16.msra.mxu1 %v875_v11 }
  0x42   : > { %893 = vmatpush.bf16.msra.mxu2 %v875_v11  ;;  %894 = vmatpush.bf16.msra.mxu3 %v875_v11 }
  0x45   : > { %478 = vmatpush.bf16.msra.mxu0 %v874_v12  ;;  %895 = vmatpush.bf16.msra.mxu1 %v874_v12 }
  0x46   : > { %896 = vmatpush.bf16.msra.mxu2 %v874_v12  ;;  %897 = vmatpush.bf16.msra.mxu3 %v874_v12 }
  0x49   : > { %479 = vmatpush.bf16.msra.mxu0 %v873_v13  ;;  %898 = vmatpush.bf16.msra.mxu1 %v873_v13 }
  0x4a   : > { %899 = vmatpush.bf16.msra.mxu2 %v873_v13  ;;  %900 = vmatpush.bf16.msra.mxu3 %v873_v13 }
  0x4d   : > { %480 = vmatpush.bf16.msra.mxu0 %v872_v14  ;;  %901 = vmatpush.bf16.msra.mxu1 %v872_v14 }
  0x4e   : > { %902 = vmatpush.bf16.msra.mxu2 %v872_v14  ;;  %903 = vmatpush.bf16.msra.mxu3 %v872_v14 }
  0x51   : > { %481 = vmatpush.bf16.msra.mxu0 %v871_v15  ;;  %904 = vmatpush.bf16.msra.mxu1 %v871_v15 }
  0x52   : > { %905 = vmatpush.bf16.msra.mxu2 %v871_v15  ;;  %906 = vmatpush.bf16.msra.mxu3 %v871_v15 }
  0x55   : > { %482 = vmatpush.bf16.msra.mxu0 %v870_v16  ;;  %907 = vmatpush.bf16.msra.mxu1 %v870_v16 }
  0x56   : > { %908 = vmatpush.bf16.msra.mxu2 %v870_v16  ;;  %909 = vmatpush.bf16.msra.mxu3 %v870_v16 }
  0x58   : > { %483 = vmatmul.bf16.vlgmr.msra.gmra.mxu0 %v866_v17  ;;  %488 = vmatmul.bf16.vlgmr.msra.gmra.mxu1 %v867_v18 }
  0x59   : > { %493 = vmatmul.bf16.vlgmr.msra.gmra.mxu2 %v868_v19  ;;  %498 = vmatmul.bf16.vlgmr.msra.gmra.mxu3 %v869_v20 }
  0xd5   : > { %v484_v23 = vpop.f32.mrf.mxu0  ;;  %v489_v24 = vpop.f32.mrf.mxu1 }
  0xd6   : > { %v504_v25 = vadd.f32 %v484_v23, %v371_v21  ;;  %v506_v26 = vadd.f32 %v489_v24, %v373_v22 }
  0xd8   : > { %512 = vst [vmem:[#allocation2 + $0x30] sm:$0xff] %v504_v25 }
  0xd9   : > { %514 = vst [vmem:[#allocation2 + $0x18] sm:$0xff] %v506_v26 }
  0xdc   : > { %v494_v31 = vpop.f32.mrf.mxu2  ;;  %v499_v32 = vpop.f32.mrf.mxu3 }
  0xdd   : > { %v508_v33 = vadd.f32 %v494_v31, %v375_v27  ;;  %v510_v34 = vadd.f32 %v499_v32, %v377_v28  ;;  %v486_v35 = vpop.f32.mrf.mxu0  ;;  %v491_v36 = vpop.f32.mrf.mxu1 }
  0xde   : > { %v505_v37 = vadd.f32 %v486_v35, %v372_v29  ;;  %v507_v38 = vadd.f32 %v491_v36, %v374_v30 }
  0xdf   : > { %516 = vst [vmem:[#allocation2 + $0x8] sm:$0xff] %v508_v33 }
  0xe0   : > { %518 = vst [vmem:[#allocation2 + $0x28] sm:$0xff] %v510_v34 }
  0xe1   : > { %513 = vst [vmem:[#allocation2] sm:$0xff] %v505_v37 }
  0xe2   : > { %515 = vst [vmem:[#allocation2 + $0x10] sm:$0xff] %v507_v38 }
  0xe4   : > { %v496_v41 = vpop.f32.mrf.mxu2  ;;  %v501_v42 = vpop.f32.mrf.mxu3  ;;  %523 = sbr.rel (%p830_p13) target bundleno = 410 (0x19a), region = 89 }
  0xe5   : > { %v509_v43 = vadd.f32 %v496_v41, %v376_v39  ;;  %v511_v44 = vadd.f32 %v501_v42, %v378_v40 }
  0xe7   : > { %517 = vst [vmem:[#allocation2 + $0x20] sm:$0xff] %v509_v43 }
  0xe8   : > { %519 = vst [vmem:[#allocation2 + $0x38] sm:$0xff] %v511_v44 }
  0xe9   : > { %v885_v45 = vld [vmem:[%s1242_s3 + $0x38] sm:$0xff]  ;;  %v884_v46 = vld [vmem:[%s1242_s3 + $0x30] sm:$0xff]  ;;  %v883_v47 = vld [vmem:[%s1242_s3 + $0x28] sm:$0xff] }
  0xea   : > { %628 = vmatpush.bf16.msra.mxu0 %v885_v45  ;;  %910 = vmatpush.bf16.msra.mxu1 %v885_v45  ;;  %v882_v48 = vld [vmem:[%s1242_s3 + $0x20] sm:$0xff]  ;;  %v881_v49 = vld [vmem:[%s1242_s3 + $0x18] sm:$0xff]  ;;  %v524_v50 = vld [vmem:[#allocation2 + $0x30] sm:$0xff] }
  0xeb   : > { %911 = vmatpush.bf16.msra.mxu2 %v885_v45  ;;  %912 = vmatpush.bf16.msra.mxu3 %v885_v45  ;;  %v532_v51 = vld [vmem:[%s1152_s12] sm:$0xff]  ;;  %v880_v52 = vld [vmem:[%s1242_s3 + $0x10] sm:$0xff]  ;;  %v533_v54 = vld [vmem:[%s1152_s12 + $0x8] sm:$0xff] }
  0xec   : > { %v525_v53 = vld [vmem:[#allocation2] sm:$0xff]  ;;  %v526_v55 = vld [vmem:[#allocation2 + $0x18] sm:$0xff]  ;;  %v527_v56 = vld [vmem:[#allocation2 + $0x10] sm:$0xff]  ;;  %v540_v3 = vadd.f32 %v532_v51, %v524_v50 }
  0xed   : > { %v534_v57 = vld [vmem:[%s1152_s12 + $0x10] sm:$0xff]  ;;  %v535_v58 = vld [vmem:[%s1152_s12 + $0x18] sm:$0xff]  ;;  %v528_v59 = vld [vmem:[#allocation2 + $0x8] sm:$0xff]  ;;  %v541_v4 = vadd.f32 %v533_v54, %v525_v53 }
  0xee   : > { %629 = vmatpush.bf16.msra.mxu0 %v884_v46  ;;  %913 = vmatpush.bf16.msra.mxu1 %v884_v46  ;;  %v529_v60 = vld [vmem:[#allocation2 + $0x20] sm:$0xff]  ;;  %v537_v62 = vld [vmem:[%s1152_s12 + $0x28] sm:$0xff]  ;;  %v538_v1 = vld [vmem:[%s1152_s12 + $0x30] sm:$0xff]  ;;  %v542_v5 = vadd.f32 %v534_v57, %v526_v55  ;;  %v543_v6 = vadd.f32 %v535_v58, %v527_v56  ;;  %v548_v12 = vmax.f32 %v540_v3, 0.0 }
  0xef   : > { %914 = vmatpush.bf16.msra.mxu2 %v884_v46  ;;  %915 = vmatpush.bf16.msra.mxu3 %v884_v46  ;;  %v536_v61 = vld [vmem:[%s1152_s12 + $0x20] sm:$0xff]  ;;  %v530_v63 = vld [vmem:[#allocation2 + $0x28] sm:$0xff]  ;;  %v531_v0 = vld [vmem:[#allocation2 + $0x38] sm:$0xff]  ;;  %v545_v9 = vadd.f32 %v537_v62, %v529_v60  ;;  %v549_v13 = vmax.f32 %v541_v4, 0.0 }
  0xf0   : > { %v539_v2 = vld [vmem:[%s1152_s12 + $0x38] sm:$0xff]  ;;  %v544_v7 = vadd.f32 %v536_v61, %v528_v59  ;;  %v879_v8 = vld [vmem:[%s1242_s3 + $0x8] sm:$0xff]  ;;  %v546_v10 = vadd.f32 %v538_v1, %v530_v63  ;;  %v550_v14 = vmax.f32 %v542_v5, 0.0  ;;  %v551_v15 = vmax.f32 %v543_v6, 0.0  ;;  %v878_v16 = vld [vmem:[%s1242_s3] sm:$0xff] }
  0xf1   : > { %v547_v11 = vadd.f32 %v539_v2, %v531_v0  ;;  %v553_v18 = vmax.f32 %v545_v9, 0.0  ;;  %v556_v21 = vpack.c.bf16 %v549_v13, %v548_v12  ;;  %v991_v25 = vld [vmem:[%s1243_s4] ss:$0 sm:$0xff] }
  0xf2   : > { %630 = vmatpush.bf16.msra.mxu0 %v883_v47  ;;  %916 = vmatpush.bf16.msra.mxu1 %v883_v47  ;;  %v552_v17 = vmax.f32 %v544_v7, 0.0  ;;  %v554_v19 = vmax.f32 %v546_v10, 0.0  ;;  %v557_v22 = vpack.c.bf16 %v551_v15, %v550_v14 }
  0xf3   : > { %917 = vmatpush.bf16.msra.mxu2 %v883_v47  ;;  %918 = vmatpush.bf16.msra.mxu3 %v883_v47  ;;  %v555_v20 = vmax.f32 %v547_v11, 0.0 }
  0xf4   : > { %v558_v23 = vpack.c.bf16 %v553_v18, %v552_v17 }
  0xf5   : > { %v559_v24 = vpack.c.bf16 %v555_v20, %v554_v19 }
  0xf6   : > { %631 = vmatpush.bf16.msra.mxu0 %v882_v48  ;;  %919 = vmatpush.bf16.msra.mxu1 %v882_v48 }
  0xf7   : > { %920 = vmatpush.bf16.msra.mxu2 %v882_v48  ;;  %921 = vmatpush.bf16.msra.mxu3 %v882_v48 }
  0xfa   : > { %632 = vmatpush.bf16.msra.mxu0 %v881_v49  ;;  %922 = vmatpush.bf16.msra.mxu1 %v881_v49 }
  0xfb   : > { %923 = vmatpush.bf16.msra.mxu2 %v881_v49  ;;  %924 = vmatpush.bf16.msra.mxu3 %v881_v49 }
  0xfe   : > { %633 = vmatpush.bf16.msra.mxu0 %v880_v52  ;;  %925 = vmatpush.bf16.msra.mxu1 %v880_v52 }
  0xff   : > { %926 = vmatpush.bf16.msra.mxu2 %v880_v52  ;;  %927 = vmatpush.bf16.msra.mxu3 %v880_v52 }
 0x102   : > { %634 = vmatpush.bf16.msra.mxu0 %v879_v8  ;;  %928 = vmatpush.bf16.msra.mxu1 %v879_v8 }
 0x103   : > { %929 = vmatpush.bf16.msra.mxu2 %v879_v8  ;;  %930 = vmatpush.bf16.msra.mxu3 %v879_v8 }
 0x106   : > { %635 = vmatpush.bf16.msra.mxu0 %v878_v16  ;;  %931 = vmatpush.bf16.msra.mxu1 %v878_v16 }
 0x107   : > { %932 = vmatpush.bf16.msra.mxu2 %v878_v16  ;;  %933 = vmatpush.bf16.msra.mxu3 %v878_v16 }
 0x109   : > { %636 = vmatmul.bf16.vlgmr.msra.gmra.mxu0 %v556_v21  ;;  %641 = vmatmul.bf16.vlgmr.msra.gmra.mxu1 %v557_v22 }
 0x10a   : > { %646 = vmatmul.bf16.vlgmr.msra.gmra.mxu2 %v558_v23  ;;  %651 = vmatmul.bf16.vlgmr.msra.gmra.mxu3 %v559_v24 }
 0x186   : > { %v637_v26 = vpop.f32.mrf.mxu0  ;;  %v642_v27 = vpop.f32.mrf.mxu1 }
 0x187   : > { %v638_v28 = vadd.f32 %v991_v25, %v637_v26  ;;  %v643_v29 = vadd.f32 %v991_v25, %v642_v27 }
 0x189   : > { %657 = vst [vmem:[%s1157_s14] sm:$0xff] %v638_v28 }
 0x18a   : > { %659 = vst [vmem:[%s1157_s14 + $0x10] sm:$0xff] %v643_v29 }
 0x18d   : > { %v647_v30 = vpop.f32.mrf.mxu2  ;;  %v652_v31 = vpop.f32.mrf.mxu3 }
 0x18e   : > { %v648_v32 = vadd.f32 %v991_v25, %v647_v30  ;;  %v653_v33 = vadd.f32 %v991_v25, %v652_v31  ;;  %v639_v34 = vpop.f32.mrf.mxu0  ;;  %v644_v35 = vpop.f32.mrf.mxu1 }
 0x18f   : > { %v640_v36 = vadd.f32 %v991_v25, %v639_v34  ;;  %v645_v37 = vadd.f32 %v991_v25, %v644_v35 }
 0x190   : > { %661 = vst [vmem:[%s1157_s14 + $0x20] sm:$0xff] %v648_v32 }
 0x191   : > { %663 = vst [vmem:[%s1157_s14 + $0x30] sm:$0xff] %v653_v33 }
 0x192   : > { %658 = vst [vmem:[%s1157_s14 + $0x8] sm:$0xff] %v640_v36 }
 0x193   : > { %660 = vst [vmem:[%s1157_s14 + $0x18] sm:$0xff] %v645_v37 }
 0x195   : > { %v649_v38 = vpop.f32.mrf.mxu2  ;;  %v654_v39 = vpop.f32.mrf.mxu3 }
 0x196   : > { %v650_v40 = vadd.f32 %v991_v25, %v649_v38  ;;  %v655_v41 = vadd.f32 %v991_v25, %v654_v39 }
 0x198   : > { %662 = vst [vmem:[%s1157_s14 + $0x28] sm:$0xff] %v650_v40 }
 0x199   : > { %664 = vst [vmem:[%s1157_s14 + $0x38] sm:$0xff] %v655_v41 }
 0x19a PF: > { %s15_s24 = sadd.s32 1, %s1046_s24   ;;  %s1245_s18 = smov %s1026_s19 }
 0x19b   : > { %p12_p0 = scmp.ge.s32.totalorder %s15_s24, 6   ;;  %s1246_s19 = smov %s1130_s6 }
 0x19c   : > { %s1247_s20 = smov %s1038_s22  ;;  %s1248_s21 = smov %s1042_s23 }
 0x19d   : > { %s1249_s22 = smov %s1252_s25  ;;  %s1250_s23 = smov %s1256_s26 }
 0x19e   :  { %14 = sbr.rel (!%p12_p0) target bundleno = 4 (0x4), region = 130 }

</bundles_post_ra>
